<compile_context>
chip_gen: v6e
topology: v6e:2x2x1
jax: 0.10.0
libtpu: 0.0.40
codegen_flags: <defaults>
</compile_context>

<pallas_src>
import functools

import jax
import jax.numpy as jnp
import numpy as np
from jax import lax
from jax.experimental import pallas as pl
from jax.experimental.pallas import tpu as pltpu


# ------------------------------ fused kernel --------------------------------

def _cross_conv_kernel(x_ref, w1_ref, s1_ref, b1_ref, w2_ref, s2_ref, b2_ref,
                       o_ref, xpad_ref, ypad_ref, *, k, stride, pad, add):
    # x_ref:    (H, W, C1)         one NHWC image (batch dim squeezed)
    # w1_ref:   (K, C1, C_)        cv1 taps         s1/b1: (1, 1, C_)  folded BN
    # w2_ref:   (K, C_, C2)        cv2 taps         s2/b2: (1, 1, C2)  folded BN
    # o_ref:    (H_out, W_out, C2)
    # xpad_ref: (H, W + 2p, C1)    VMEM halo buffer for cv1 (conv along W)
    # ypad_ref: (H + 2p, W_out, C_) VMEM-resident cv1 output + halo for cv2
    H, W, _ = x_ref.shape
    H_out, W_out, _ = o_ref.shape
    c_mid = w1_ref.shape[2]
    c_out = w2_ref.shape[2]

    x = x_ref[...]

    # ---- in-kernel halo for cv1 (conv along W): zero-padded VMEM scratch ----
    xpad_ref[...] = jnp.zeros_like(xpad_ref)
    xpad_ref[:, pad:pad + W, :] = x.astype(xpad_ref.dtype)

    # ---- cv1: (1,k) conv, stride (1,s), folded BN, SiLU -----------------------
    # Small static tap loop; with tiny Cin the MXU is under-filled either way.
    # For large Cin, switch to a single K*Cin-contraction matmul (im2col of
    # the K shifted views) for better systolic utilization.
    acc1 = jnp.zeros((H, W_out, c_mid), jnp.float32)
    for t in range(k):
        if stride == 1:
            xt = xpad_ref[:, t:t + W_out, :]
        else:
            xt = xpad_ref[:, pl.ds(t, W_out, stride=stride), :]
        acc1 = acc1 + jnp.einsum("hwc,cd->hwd", xt, w1_ref[t],
                                 preferred_element_type=jnp.float32)
    y1 = acc1 * s1_ref[...] + b1_ref[...]
    y1 = y1 * jax.nn.sigmoid(y1)                       # SiLU

    # ---- cv2 halo (conv along H); intermediate never leaves VMEM -------------
    ypad_ref[...] = jnp.zeros_like(ypad_ref)
    ypad_ref[pad:pad + H, :, :] = y1.astype(ypad_ref.dtype)

    # ---- cv2: (k,1) conv, stride (s,1), folded BN, SiLU -----------------------
    acc2 = jnp.zeros((H_out, W_out, c_out), jnp.float32)
    for t in range(k):
        if stride == 1:
            yt = ypad_ref[t:t + H_out, :, :]
        else:
            yt = ypad_ref[pl.ds(t, H_out, stride=stride), :, :]
        acc2 = acc2 + jnp.einsum("hwc,cd->hwd", yt, w2_ref[t],
                                 preferred_element_type=jnp.float32)
    y2 = acc2 * s2_ref[...] + b2_ref[...]
    y2 = y2 * jax.nn.sigmoid(y2)                       # SiLU

    if add:  # fused residual (shortcut and c1 == c2; requires s == 1)
        y2 = y2 + x.astype(jnp.float32)

    o_ref[...] = y2.astype(o_ref.dtype)


def _cross_conv_pallas(x_nhwc, w1, s1, b1, w2, s2, b2, *, k, s, add,
                       compute_dtype=jnp.float32):
    N, H, W, C1 = x_nhwc.shape
    K, _, C_mid = w1.shape
    _, _, C2 = w2.shape
    p = k // 2
    W_out = (W + 2 * p - k) // s + 1
    H_out = (H + 2 * p - k) // s + 1

    # Cast activations/weights to the compute dtype at the boundary
    # (bf16 on v6e/v7x halves HBM traffic; BN params stay f32).
    x_in = x_nhwc.astype(compute_dtype)
    w1c = w1.astype(compute_dtype)
    w2c = w2.astype(compute_dtype)

    kernel = functools.partial(_cross_conv_kernel, k=k, stride=s, pad=p, add=add)

    return pl.pallas_call(
        kernel,
        out_shape=jax.ShapeDtypeStruct((N, H_out, W_out, C2), x_nhwc.dtype),
        grid_spec=pltpu.PrefetchScalarGridSpec(
            num_scalar_prefetch=0,
            grid=(N,),   # one full image per step; steps shard over v7x's 2 TCs
            in_specs=[
                pl.BlockSpec((None, H, W, C1), lambda n: (n, 0, 0, 0)),
                # Weights / BN params are tiny and grid-invariant.  For
                # realistic YOLO sizes, single-buffer them to save VMEM
                # (matters on v7x's 64 MiB).
                pl.BlockSpec((K, C1, C_mid), lambda n: (0, 0, 0)),
                pl.BlockSpec((1, 1, C_mid), lambda n: (0, 0, 0)),
                pl.BlockSpec((1, 1, C_mid), lambda n: (0, 0, 0)),
                pl.BlockSpec((K, C_mid, C2), lambda n: (0, 0, 0)),
                pl.BlockSpec((1, 1, C2), lambda n: (0, 0, 0)),
                pl.BlockSpec((1, 1, C2), lambda n: (0, 0, 0)),
            ],
            out_specs=pl.BlockSpec((None, H_out, W_out, C2),
                                   lambda n: (n, 0, 0, 0)),
            scratch_shapes=[
                pltpu.VMEM((H, W + 2 * p, C1), compute_dtype),        # cv1 halo
                pltpu.VMEM((H + 2 * p, W_out, C_mid), compute_dtype),  # cv1 out + cv2 halo
            ],
        ),
        compiler_params=pltpu.CompilerParams(
            dimension_semantics=("parallel",),
            # NOTE: for large feature maps raise vmem_limit_bytes (v5e default
            # scoped limit is 16 MiB) and re-derive the image tile for v7x's
            # 64 MiB physical VMEM.
        ),
    )(x_in, w1c, s1, b1, w2c, s2, b2)


# ----------------------------- CrossConv wrapper -----------------------------

def cross_conv_forward(x, params, *, k=3, s=1, g=1, add=False,
                       compute_dtype=jnp.float32):
    """x: (N, C1, H, W) NCHW float32. Returns NCHW output (PyTorch semantics)."""
    assert g == 1  # TODO(synk): grouped conv (g > 1) for cv2 not implemented.
    if add:
        assert s == 1, "residual shortcut requires stride 1 (same as PyTorch)"
    x_nhwc = jnp.transpose(x, (0, 2, 3, 1))            # single layout pass in
    out = _cross_conv_pallas(
        x_nhwc, params["w1"], params["s1"], params["b1"],
        params["w2"], params["s2"], params["b2"],
        k=k, s=s, add=add, compute_dtype=compute_dtype)
    return jnp.transpose(out, (0, 3, 1, 2))            # single layout pass out


# ------------------------ deterministic parameter init -----------------------

def init_params(key, c1, c2, *, k=3, e=1.0):
    c_ = int(c2 * e)
    eps = 1e-5
    ks = jax.random.split(key, 10)

    # PyTorch conv weights, OIHW
    w1_oihw = 0.1 * jax.random.normal(ks[0], (c_, c1, 1, k), jnp.float32)
    w2_oihw = 0.1 * jax.random.normal(ks[1], (c2, c_, k, 1), jnp.float32)

    # Kernel layout: (tap, Cin, Cout)
    w1 = jnp.transpose(w1_oihw[:, :, 0, :], (2, 1, 0))       # (k, c1, c_)
    w2 = jnp.transpose(w2_oihw[:, :, :, 0], (2, 1, 0))       # (k, c_, c2)

    def bn(kg, kb, km, kv, c):
        gamma = 1.0 + 0.1 * jax.random.normal(kg, (c,), jnp.float32)
        beta = 0.1 * jax.random.normal(kb, (c,), jnp.float32)
        mean = 0.1 * jax.random.normal(km, (c,), jnp.float32)
        var = 0.5 + jax.random.uniform(kv, (c,), jnp.float32)
        scale = gamma / jnp.sqrt(var + eps)
        bias = beta - mean * scale
        return scale, bias

    s1, b1 = bn(ks[2], ks[3], ks[4], ks[5], c_)
    s2, b2 = bn(ks[6], ks[7], ks[8], ks[9], c2)

    return dict(
        w1=w1, s1=s1.reshape(1, 1, c_), b1=b1.reshape(1, 1, c_),
        w2=w2, s2=s2.reshape(1, 1, c2), b2=b2.reshape(1, 1, c2),
        w1_oihw=w1_oihw, w2_oihw=w2_oihw,
        s1_vec=s1, b1_vec=b1, s2_vec=s2, b2_vec=b2,
    )


# -------------------------------- JAX reference -------------------------------

def reference(x, params, *, k=3, s=1, add=False):
    p = k // 2
    y = lax.conv_general_dilated(
        x, params["w1_oihw"], (1, s), ((0, 0), (p, p)),
        dimension_numbers=("NCHW", "OIHW", "NCHW"))
    y = y * params["s1_vec"].reshape(1, -1, 1, 1) + params["b1_vec"].reshape(1, -1, 1, 1)
    y = y * jax.nn.sigmoid(y)
    z = lax.conv_general_dilated(
        y, params["w2_oihw"], (s, 1), ((p, p), (0, 0)),
        dimension_numbers=("NCHW", "OIHW", "NCHW"))
    z = z * params["s2_vec"].reshape(1, -1, 1, 1) + params["b2_vec"].reshape(1, -1, 1, 1)
    z = z * jax.nn.sigmoid(z)
    return x + z if add else z


# ------------------------------------ main ------------------------------------

if __name__ == "__main__":
    key = jax.random.PRNGKey(0)
    kx, kp = jax.random.split(key)

    # CrossConv(c1=4, c2=4, k=3, s=1, g=1, e=1.0)
    N, C1, H, W = 2, 4, 16, 16
    C2, K, S, G, E = 4, 3, 1, 1, 1.0

    x = jax.random.normal(kx, (N, C1, H, W), jnp.float32)
    params = init_params(kp, C1, C2, k=K, e=E)

    # shortcut=False path
    out = cross_conv_forward(x, params, k=K, s=S, g=G, add=False)
    out = jax.block_until_ready(out)
    ref = jax.block_until_ready(reference(x, params, k=K, s=S, add=False))
    np.testing.assert_allclose(np.asarray(out), np.asarray(ref),
                               rtol=1e-4, atol=1e-4)

    # shortcut=True path (c1 == c2) exercises the fused residual add
    out_add = cross_conv_forward(x, params, k=K, s=S, g=G, add=True)
    out_add = jax.block_until_ready(out_add)
    ref_add = jax.block_until_ready(reference(x, params, k=K, s=S, add=True))
    np.testing.assert_allclose(np.asarray(out_add), np.asarray(ref_add),
                               rtol=1e-4, atol=1e-4)

    print("KERNEL_OK")
</pallas_src>

<mosaic_0001>
module attributes {stable_mosaic.version = 11 : i64} {
  func.func @_cross_conv_kernel(%arg0: i32, %arg1: memref<1x16x16x4xf32, #tpu.memory_space<vmem>>, %arg2: memref<3x4x4xf32, #tpu.memory_space<vmem>>, %arg3: memref<1x1x4xf32, #tpu.memory_space<vmem>>, %arg4: memref<1x1x4xf32, #tpu.memory_space<vmem>>, %arg5: memref<3x4x4xf32, #tpu.memory_space<vmem>>, %arg6: memref<1x1x4xf32, #tpu.memory_space<vmem>>, %arg7: memref<1x1x4xf32, #tpu.memory_space<vmem>>, %arg8: memref<1x16x16x4xf32, #tpu.memory_space<vmem>>, %arg9: memref<16x18x4xf32, #tpu.memory_space<vmem>>, %arg10: memref<18x16x4xf32, #tpu.memory_space<vmem>>) attributes {dimension_semantics = [#tpu.dimension_semantics<parallel>], iteration_bounds = array<i64: 2>, scalar_prefetch = 0 : i64, scratch_operands = 2 : i64, tpu.core_type = #tpu.core_type<tc>, window_params = [{transform_indices = @transform_0, window_bounds = array<i64: 1, 16, 16, 4>}, {pipeline_mode = #tpu.pipeline_mode<synchronous>, transform_indices = @transform_1, window_bounds = array<i64: 3, 4, 4>}, {pipeline_mode = #tpu.pipeline_mode<synchronous>, transform_indices = @transform_2, window_bounds = array<i64: 1, 1, 4>}, {pipeline_mode = #tpu.pipeline_mode<synchronous>, transform_indices = @transform_3, window_bounds = array<i64: 1, 1, 4>}, {pipeline_mode = #tpu.pipeline_mode<synchronous>, transform_indices = @transform_4, window_bounds = array<i64: 3, 4, 4>}, {pipeline_mode = #tpu.pipeline_mode<synchronous>, transform_indices = @transform_5, window_bounds = array<i64: 1, 1, 4>}, {pipeline_mode = #tpu.pipeline_mode<synchronous>, transform_indices = @transform_6, window_bounds = array<i64: 1, 1, 4>}, {transform_indices = @transform_7, window_bounds = array<i64: 1, 16, 16, 4>}]} {
    %c0 = arith.constant 0 : index
    %c0_0 = arith.constant 0 : index
    %c0_1 = arith.constant 0 : index
    %c0_2 = arith.constant 0 : index
    %0 = vector.load %arg1[%c0, %c0_0, %c0_1, %c0_2] : memref<1x16x16x4xf32, #tpu.memory_space<vmem>>, vector<1x16x16x4xf32>
    %1 = vector.shape_cast %0 : vector<1x16x16x4xf32> to vector<16x16x4xf32>
    %cst = arith.constant 0.000000e+00 : f32
    %2 = vector.broadcast %cst : f32 to vector<16x18x4xf32>
    %c0_3 = arith.constant 0 : index
    %c0_4 = arith.constant 0 : index
    %c0_5 = arith.constant 0 : index
    %3 = vector.load %arg9[%c0_3, %c0_4, %c0_5] : memref<16x18x4xf32, #tpu.memory_space<vmem>>, vector<16x18x4xf32>
    tpu.vector_store %arg9[%c0_3, %c0_4, %c0_5], %2 {strides = array<i32>} : memref<16x18x4xf32, #tpu.memory_space<vmem>>, vector<16x18x4xf32>,
    %c0_6 = arith.constant 0 : index
    %c1 = arith.constant 1 : index
    %c0_7 = arith.constant 0 : index
    %4 = vector.load %arg9[%c0_6, %c1, %c0_7] : memref<16x18x4xf32, #tpu.memory_space<vmem>>, vector<16x16x4xf32>
    tpu.vector_store %arg9[%c0_6, %c1, %c0_7], %1 {strides = array<i32>} : memref<16x18x4xf32, #tpu.memory_space<vmem>>, vector<16x16x4xf32>,
    %cst_8 = arith.constant 0.000000e+00 : f32
    %5 = vector.broadcast %cst_8 : f32 to vector<16x16x4xf32>
    %c0_9 = arith.constant 0 : index
    %c0_10 = arith.constant 0 : index
    %c0_11 = arith.constant 0 : index
    %6 = vector.load %arg9[%c0_9, %c0_10, %c0_11] : memref<16x18x4xf32, #tpu.memory_space<vmem>>, vector<16x16x4xf32>
    %c0_12 = arith.constant 0 : index
    %c0_13 = arith.constant 0 : index
    %c0_14 = arith.constant 0 : index
    %7 = vector.load %arg2[%c0_12, %c0_13, %c0_14] : memref<3x4x4xf32, #tpu.memory_space<vmem>>, vector<1x4x4xf32>
    %8 = vector.shape_cast %7 : vector<1x4x4xf32> to vector<4x4xf32>
    "tpu.trace_start"() <{level = 10 : i32, message = "hwc,cd->hwd"}> : () -> ()
    %cst_15 = arith.constant dense<0.000000e+00> : vector<16x16x4xf32>
    %9 = tpu.matmul %6, %8, %cst_15 {dimension_numbers = #tpu.dot_dimension_numbers<[2], [0], [0, 1], [1], [0, 0, 0, 1, 1, 1], [], []>} : vector<16x16x4xf32>, vector<4x4xf32>, vector<16x16x4xf32> -> vector<16x16x4xf32>
    "tpu.trace_stop"() : () -> ()
    %10 = arith.addf %5, %9 : vector<16x16x4xf32>
    %c0_16 = arith.constant 0 : index
    %c1_17 = arith.constant 1 : index
    %c0_18 = arith.constant 0 : index
    %11 = vector.load %arg9[%c0_16, %c1_17, %c0_18] : memref<16x18x4xf32, #tpu.memory_space<vmem>>, vector<16x16x4xf32>
    %c1_19 = arith.constant 1 : index
    %c0_20 = arith.constant 0 : index
    %c0_21 = arith.constant 0 : index
    %12 = vector.load %arg2[%c1_19, %c0_20, %c0_21] : memref<3x4x4xf32, #tpu.memory_space<vmem>>, vector<1x4x4xf32>
    %13 = vector.shape_cast %12 : vector<1x4x4xf32> to vector<4x4xf32>
    "tpu.trace_start"() <{level = 10 : i32, message = "hwc,cd->hwd"}> : () -> ()
    %cst_22 = arith.constant dense<0.000000e+00> : vector<16x16x4xf32>
    %14 = tpu.matmul %11, %13, %cst_22 {dimension_numbers = #tpu.dot_dimension_numbers<[2], [0], [0, 1], [1], [0, 0, 0, 1, 1, 1], [], []>} : vector<16x16x4xf32>, vector<4x4xf32>, vector<16x16x4xf32> -> vector<16x16x4xf32>
    "tpu.trace_stop"() : () -> ()
    %15 = arith.addf %10, %14 : vector<16x16x4xf32>
    %c0_23 = arith.constant 0 : index
    %c2 = arith.constant 2 : index
    %c0_24 = arith.constant 0 : index
    %16 = vector.load %arg9[%c0_23, %c2, %c0_24] : memref<16x18x4xf32, #tpu.memory_space<vmem>>, vector<16x16x4xf32>
    %c2_25 = arith.constant 2 : index
    %c0_26 = arith.constant 0 : index
    %c0_27 = arith.constant 0 : index
    %17 = vector.load %arg2[%c2_25, %c0_26, %c0_27] : memref<3x4x4xf32, #tpu.memory_space<vmem>>, vector<1x4x4xf32>
    %18 = vector.shape_cast %17 : vector<1x4x4xf32> to vector<4x4xf32>
    "tpu.trace_start"() <{level = 10 : i32, message = "hwc,cd->hwd"}> : () -> ()
    %cst_28 = arith.constant dense<0.000000e+00> : vector<16x16x4xf32>
    %19 = tpu.matmul %16, %18, %cst_28 {dimension_numbers = #tpu.dot_dimension_numbers<[2], [0], [0, 1], [1], [0, 0, 0, 1, 1, 1], [], []>} : vector<16x16x4xf32>, vector<4x4xf32>, vector<16x16x4xf32> -> vector<16x16x4xf32>
    "tpu.trace_stop"() : () -> ()
    %20 = arith.addf %15, %19 : vector<16x16x4xf32>
    %c0_29 = arith.constant 0 : index
    %c0_30 = arith.constant 0 : index
    %c0_31 = arith.constant 0 : index
    %21 = vector.load %arg3[%c0_29, %c0_30, %c0_31] : memref<1x1x4xf32, #tpu.memory_space<vmem>>, vector<1x1x4xf32>
    %22 = vector.broadcast %21 : vector<1x1x4xf32> to vector<16x16x4xf32>
    %23 = arith.mulf %20, %22 : vector<16x16x4xf32>
    %c0_32 = arith.constant 0 : index
    %c0_33 = arith.constant 0 : index
    %c0_34 = arith.constant 0 : index
    %24 = vector.load %arg4[%c0_32, %c0_33, %c0_34] : memref<1x1x4xf32, #tpu.memory_space<vmem>>, vector<1x1x4xf32>
    %25 = vector.broadcast %24 : vector<1x1x4xf32> to vector<16x16x4xf32>
    %26 = arith.addf %23, %25 : vector<16x16x4xf32>
    %27 = arith.negf %26 : vector<16x16x4xf32>
    %28 = math.exp %27 : vector<16x16x4xf32>
    %cst_35 = arith.constant 1.000000e+00 : f32
    %29 = vector.broadcast %cst_35 : f32 to vector<16x16x4xf32>
    %30 = arith.addf %29, %28 : vector<16x16x4xf32>
    %31 = arith.divf %29, %30 : vector<16x16x4xf32>
    %32 = arith.mulf %26, %31 : vector<16x16x4xf32>
    %cst_36 = arith.constant 0.000000e+00 : f32
    %33 = vector.broadcast %cst_36 : f32 to vector<18x16x4xf32>
    %c0_37 = arith.constant 0 : index
    %c0_38 = arith.constant 0 : index
    %c0_39 = arith.constant 0 : index
    %34 = vector.load %arg10[%c0_37, %c0_38, %c0_39] : memref<18x16x4xf32, #tpu.memory_space<vmem>>, vector<18x16x4xf32>
    tpu.vector_store %arg10[%c0_37, %c0_38, %c0_39], %33 {strides = array<i32>} : memref<18x16x4xf32, #tpu.memory_space<vmem>>, vector<18x16x4xf32>,
    %c1_40 = arith.constant 1 : index
    %c0_41 = arith.constant 0 : index
    %c0_42 = arith.constant 0 : index
    %35 = vector.load %arg10[%c1_40, %c0_41, %c0_42] : memref<18x16x4xf32, #tpu.memory_space<vmem>>, vector<16x16x4xf32>
    tpu.vector_store %arg10[%c1_40, %c0_41, %c0_42], %32 {strides = array<i32>} : memref<18x16x4xf32, #tpu.memory_space<vmem>>, vector<16x16x4xf32>,
    %cst_43 = arith.constant 0.000000e+00 : f32
    %36 = vector.broadcast %cst_43 : f32 to vector<16x16x4xf32>
    %c0_44 = arith.constant 0 : index
    %c0_45 = arith.constant 0 : index
    %c0_46 = arith.constant 0 : index
    %37 = vector.load %arg10[%c0_44, %c0_45, %c0_46] : memref<18x16x4xf32, #tpu.memory_space<vmem>>, vector<16x16x4xf32>
    %c0_47 = arith.constant 0 : index
    %c0_48 = arith.constant 0 : index
    %c0_49 = arith.constant 0 : index
    %38 = vector.load %arg5[%c0_47, %c0_48, %c0_49] : memref<3x4x4xf32, #tpu.memory_space<vmem>>, vector<1x4x4xf32>
    %39 = vector.shape_cast %38 : vector<1x4x4xf32> to vector<4x4xf32>
    "tpu.trace_start"() <{level = 10 : i32, message = "hwc,cd->hwd"}> : () -> ()
    %cst_50 = arith.constant dense<0.000000e+00> : vector<16x16x4xf32>
    %40 = tpu.matmul %37, %39, %cst_50 {dimension_numbers = #tpu.dot_dimension_numbers<[2], [0], [0, 1], [1], [0, 0, 0, 1, 1, 1], [], []>} : vector<16x16x4xf32>, vector<4x4xf32>, vector<16x16x4xf32> -> vector<16x16x4xf32>
    "tpu.trace_stop"() : () -> ()
    %41 = arith.addf %36, %40 : vector<16x16x4xf32>
    %c1_51 = arith.constant 1 : index
    %c0_52 = arith.constant 0 : index
    %c0_53 = arith.constant 0 : index
    %42 = vector.load %arg10[%c1_51, %c0_52, %c0_53] : memref<18x16x4xf32, #tpu.memory_space<vmem>>, vector<16x16x4xf32>
    %c1_54 = arith.constant 1 : index
    %c0_55 = arith.constant 0 : index
    %c0_56 = arith.constant 0 : index
    %43 = vector.load %arg5[%c1_54, %c0_55, %c0_56] : memref<3x4x4xf32, #tpu.memory_space<vmem>>, vector<1x4x4xf32>
    %44 = vector.shape_cast %43 : vector<1x4x4xf32> to vector<4x4xf32>
    "tpu.trace_start"() <{level = 10 : i32, message = "hwc,cd->hwd"}> : () -> ()
    %cst_57 = arith.constant dense<0.000000e+00> : vector<16x16x4xf32>
    %45 = tpu.matmul %42, %44, %cst_57 {dimension_numbers = #tpu.dot_dimension_numbers<[2], [0], [0, 1], [1], [0, 0, 0, 1, 1, 1], [], []>} : vector<16x16x4xf32>, vector<4x4xf32>, vector<16x16x4xf32> -> vector<16x16x4xf32>
    "tpu.trace_stop"() : () -> ()
    %46 = arith.addf %41, %45 : vector<16x16x4xf32>
    %c2_58 = arith.constant 2 : index
    %c0_59 = arith.constant 0 : index
    %c0_60 = arith.constant 0 : index
    %47 = vector.load %arg10[%c2_58, %c0_59, %c0_60] : memref<18x16x4xf32, #tpu.memory_space<vmem>>, vector<16x16x4xf32>
    %c2_61 = arith.constant 2 : index
    %c0_62 = arith.constant 0 : index
    %c0_63 = arith.constant 0 : index
    %48 = vector.load %arg5[%c2_61, %c0_62, %c0_63] : memref<3x4x4xf32, #tpu.memory_space<vmem>>, vector<1x4x4xf32>
    %49 = vector.shape_cast %48 : vector<1x4x4xf32> to vector<4x4xf32>
    "tpu.trace_start"() <{level = 10 : i32, message = "hwc,cd->hwd"}> : () -> ()
    %cst_64 = arith.constant dense<0.000000e+00> : vector<16x16x4xf32>
    %50 = tpu.matmul %47, %49, %cst_64 {dimension_numbers = #tpu.dot_dimension_numbers<[2], [0], [0, 1], [1], [0, 0, 0, 1, 1, 1], [], []>} : vector<16x16x4xf32>, vector<4x4xf32>, vector<16x16x4xf32> -> vector<16x16x4xf32>
    "tpu.trace_stop"() : () -> ()
    %51 = arith.addf %46, %50 : vector<16x16x4xf32>
    %c0_65 = arith.constant 0 : index
    %c0_66 = arith.constant 0 : index
    %c0_67 = arith.constant 0 : index
    %52 = vector.load %arg6[%c0_65, %c0_66, %c0_67] : memref<1x1x4xf32, #tpu.memory_space<vmem>>, vector<1x1x4xf32>
    %53 = vector.broadcast %52 : vector<1x1x4xf32> to vector<16x16x4xf32>
    %54 = arith.mulf %51, %53 : vector<16x16x4xf32>
    %c0_68 = arith.constant 0 : index
    %c0_69 = arith.constant 0 : index
    %c0_70 = arith.constant 0 : index
    %55 = vector.load %arg7[%c0_68, %c0_69, %c0_70] : memref<1x1x4xf32, #tpu.memory_space<vmem>>, vector<1x1x4xf32>
    %56 = vector.broadcast %55 : vector<1x1x4xf32> to vector<16x16x4xf32>
    %57 = arith.addf %54, %56 : vector<16x16x4xf32>
    %58 = arith.negf %57 : vector<16x16x4xf32>
    %59 = math.exp %58 : vector<16x16x4xf32>
    %cst_71 = arith.constant 1.000000e+00 : f32
    %60 = vector.broadcast %cst_71 : f32 to vector<16x16x4xf32>
    %61 = arith.addf %60, %59 : vector<16x16x4xf32>
    %62 = arith.divf %60, %61 : vector<16x16x4xf32>
    %63 = arith.mulf %57, %62 : vector<16x16x4xf32>
    %c0_72 = arith.constant 0 : index
    %c0_73 = arith.constant 0 : index
    %c0_74 = arith.constant 0 : index
    %c0_75 = arith.constant 0 : index
    %64 = vector.load %arg8[%c0_72, %c0_73, %c0_74, %c0_75] : memref<1x16x16x4xf32, #tpu.memory_space<vmem>>, vector<1x16x16x4xf32>
    %65 = vector.shape_cast %64 : vector<1x16x16x4xf32> to vector<16x16x4xf32>
    %66 = vector.shape_cast %63 : vector<16x16x4xf32> to vector<1x16x16x4xf32>
    tpu.vector_store %arg8[%c0_72, %c0_73, %c0_74, %c0_75], %66 {strides = array<i32>} : memref<1x16x16x4xf32, #tpu.memory_space<vmem>>, vector<1x16x16x4xf32>,
    return
  }
  func.func @transform_0(%arg0: i32) -> (i32, i32, i32, i32) {
    %c0_i32 = arith.constant 0 : i32
    %c0_i32_0 = arith.constant 0 : i32
    %c0_i32_1 = arith.constant 0 : i32
    %c0_i32_2 = arith.constant 0 : i32
    return %arg0, %c0_i32, %c0_i32_0, %c0_i32_1 : i32, i32, i32, i32
  }
  func.func @transform_1(%arg0: i32) -> (i32, i32, i32) {
    %c0_i32 = arith.constant 0 : i32
    %c0_i32_0 = arith.constant 0 : i32
    %c0_i32_1 = arith.constant 0 : i32
    %c0_i32_2 = arith.constant 0 : i32
    return %c0_i32, %c0_i32_0, %c0_i32_1 : i32, i32, i32
  }
  func.func @transform_2(%arg0: i32) -> (i32, i32, i32) {
    %c0_i32 = arith.constant 0 : i32
    %c0_i32_0 = arith.constant 0 : i32
    %c0_i32_1 = arith.constant 0 : i32
    %c0_i32_2 = arith.constant 0 : i32
    return %c0_i32, %c0_i32_0, %c0_i32_1 : i32, i32, i32
  }
  func.func @transform_3(%arg0: i32) -> (i32, i32, i32) {
    %c0_i32 = arith.constant 0 : i32
    %c0_i32_0 = arith.constant 0 : i32
    %c0_i32_1 = arith.constant 0 : i32
    %c0_i32_2 = arith.constant 0 : i32
    return %c0_i32, %c0_i32_0, %c0_i32_1 : i32, i32, i32
  }
  func.func @transform_4(%arg0: i32) -> (i32, i32, i32) {
    %c0_i32 = arith.constant 0 : i32
    %c0_i32_0 = arith.constant 0 : i32
    %c0_i32_1 = arith.constant 0 : i32
    %c0_i32_2 = arith.constant 0 : i32
    return %c0_i32, %c0_i32_0, %c0_i32_1 : i32, i32, i32
  }
  func.func @transform_5(%arg0: i32) -> (i32, i32, i32) {
    %c0_i32 = arith.constant 0 : i32
    %c0_i32_0 = arith.constant 0 : i32
    %c0_i32_1 = arith.constant 0 : i32
    %c0_i32_2 = arith.constant 0 : i32
    return %c0_i32, %c0_i32_0, %c0_i32_1 : i32, i32, i32
  }
  func.func @transform_6(%arg0: i32) -> (i32, i32, i32) {
    %c0_i32 = arith.constant 0 : i32
    %c0_i32_0 = arith.constant 0 : i32
    %c0_i32_1 = arith.constant 0 : i32
    %c0_i32_2 = arith.constant 0 : i32
    return %c0_i32, %c0_i32_0, %c0_i32_1 : i32, i32, i32
  }
  func.func @transform_7(%arg0: i32) -> (i32, i32, i32, i32) {
    %c0_i32 = arith.constant 0 : i32
    %c0_i32_0 = arith.constant 0 : i32
    %c0_i32_1 = arith.constant 0 : i32
    %c0_i32_2 = arith.constant 0 : i32
    return %arg0, %c0_i32, %c0_i32_0, %c0_i32_1 : i32, i32, i32, i32
  }
}

</mosaic_0001>

<bundles_post_ra>
// kernel: tpu_custom_call.1
= control target key start
LH: loop header
LB: loop body
LE: loop exit
PB: predicated region body
PF: predicated region fallthrough
CT: control target
= control target key end

     0   :  { %s4460_s24 = smov 0   ;;  %s5938_s0 = inlined_call_operand.vmem [shape: f32[2,16,16,4], index: 0, kind: input, shape index: {}]   ;;  %s5939_s1 = inlined_call_operand.vmem [shape: f32[3,4,4], index: 1, kind: input, shape index: {}]   ;;  %s5940_s2 = inlined_call_operand.vmem [shape: f32[1,1,4], index: 2, kind: input, shape index: {}]   ;;  %s5941_s3 = inlined_call_operand.vmem [shape: f32[1,1,4], index: 3, kind: input, shape index: {}]   ;;  %s5942_s4 = inlined_call_operand.vmem [shape: f32[3,4,4], index: 4, kind: input, shape index: {}]   ;;  %s5943_s5 = inlined_call_operand.vmem [shape: f32[1,1,4], index: 5, kind: input, shape index: {}]   ;;  %s5944_s6 = inlined_call_operand.vmem [shape: f32[1,1,4], index: 6, kind: input, shape index: {}]   ;;  %s5945_s7 = inlined_call_operand.vmem [shape: f32[2,16,16,4], index: 7, kind: output, shape index: {}]  }
   0x1 LB: > { %s3365_s25 = sadd.s32 4294967295, %s4417_s24   ;;  %p3369_p0 = scmp.ge.s32.totalorder %s4417_s24, 1  ;;  %s4417_s24 = sphi %s4460_s24, %s17_s24  }
   0x2   : > { %p237_p1 = scmp.lt.s32.totalorder %s4417_s24, 3 }
   0x4   : > { %p238_p2 = pnand %p3369_p0, %p237_p1 }
   0x6   : > { %241 = sbr.rel (%p238_p2) target bundleno = 740 (0x2e4), region = 48 }
   0xb   : > { %v3374_v0 = vld [vmem:[%s5939_s1 + $0x4] sm:$0xf]  ;;  %vm556_vm0 = vcmask 1043456   ;;  %v4474_v1 = vld [vmem:[%s5939_s1] sm:$0xf]  ;;  %p269_p3 = scmp.lt.s32.totalorder %s3365_s25, 1 }
   0xc   : > { %3846 = vmatprep.subr.msk.mxu0 %vm556_vm0, %v3374_v0  ;;  %3896 = vmatprep.subr.msk.mxu1 %vm556_vm0, %v4474_v1  ;;  %vm311_vm1 = vcmask 31744   ;;  %v4482_v2 = vld [vmem:[%s5939_s1 + $0x8] sm:$0xf]  ;;  %vm314_vm2 = vcmask 25600   ;;  %v4419_v3 = vmov 0.0  }
   0xd   : > { %3847 = vmatpush3.msk.msra.mxu0 %vm556_vm0, %v3374_v0  ;;  %s5958_s25 = smov (!%p269_p3, %s3365_s25), 1  ;;  %312 = vst.msk [vmem:[#allocation2] sm:$0xff] %vm311_vm1, %v4419_v3  ;;  %313 = vst.msk [vmem:[#allocation2 + $0x8] sm:$0xff] %vm311_vm1, %v4419_v3  ;;  %3897 = vmatpush3.msk.msra.mxu1 %vm556_vm0, %v4474_v1 }
   0xe   : > { %316 = vst.msk [vmem:[#allocation2 + $0x18] sm:$0xff] %vm311_vm1, %v4419_v3  ;;  %317 = vst.msk [vmem:[#allocation2 + $0x20] sm:$0xff] %vm311_vm1, %v4419_v3  ;;  %3946 = vmatprep.subr.msk.mxu0 %vm556_vm0, %v4482_v2  ;;  %s3646_s9 = sshll.u32 %s5958_s25, 8 }
   0xf   : > { %319 = vst.msk [vmem:[#allocation2 + $0x30] sm:$0xff] %vm311_vm1, %v4419_v3  ;;  %320 = vst.msk [vmem:[#allocation2 + $0x38] sm:$0xff] %vm311_vm1, %v4419_v3  ;;  %s4665_s12 = scalar_lea.vmem %s5938_s0, %s3646_s9  ;;  %s5742_s8 = scalar_lea.vmem %s5945_s7, %s3646_s9 }
  0x10   : > { %322 = vst.msk [vmem:[#allocation2 + $0x48] sm:$0xff] %vm311_vm1, %v4419_v3  ;;  %323 = vst.msk [vmem:[#allocation2 + $0x50] sm:$0xff] %vm311_vm1, %v4419_v3  ;;  %v279_v4 = vld [vmem:[%s4665_s12] sm:$0xff]  ;;  %v280_v5 = vld [vmem:[%s4665_s12 + $0x8] sm:$0xff] }
  0x11   : > { %325 = vst.msk [vmem:[#allocation2 + $0x60] sm:$0xff] %vm311_vm1, %v4419_v3  ;;  %326 = vst.msk [vmem:[#allocation2 + $0x68] sm:$0xff] %vm311_vm1, %v4419_v3  ;;  %v281_v6 = vld [vmem:[%s4665_s12 + $0x10] sm:$0xff]  ;;  %v282_v7 = vld [vmem:[%s4665_s12 + $0x18] sm:$0xff] }
  0x12   : > { %328 = vst.msk [vmem:[#allocation2 + $0x78] sm:$0xff] %vm311_vm1, %v4419_v3  ;;  %329 = vst.msk [vmem:[#allocation2 + $0x80] sm:$0xff] %vm311_vm1, %v4419_v3  ;;  %v283_v8 = vld [vmem:[%s4665_s12 + $0x20] sm:$0xff]  ;;  %v284_v9 = vld [vmem:[%s4665_s12 + $0x28] sm:$0xff] }
  0x13   : > { %331 = vst.msk [vmem:[#allocation2 + $0x90] sm:$0xff] %vm311_vm1, %v4419_v3  ;;  %332 = vst.msk [vmem:[#allocation2 + $0x98] sm:$0xff] %vm311_vm1, %v4419_v3  ;;  %v285_v10 = vld [vmem:[%s4665_s12 + $0x30] sm:$0xff]  ;;  %v286_v11 = vld [vmem:[%s4665_s12 + $0x38] sm:$0xff] }
  0x14   : > { %334 = vst.msk [vmem:[#allocation2 + $0xa8] sm:$0xff] %vm311_vm1, %v4419_v3  ;;  %335 = vst.msk [vmem:[#allocation2 + $0xb0] sm:$0xff] %vm311_vm1, %v4419_v3  ;;  %v287_v12 = vld [vmem:[%s4665_s12 + $0x40] sm:$0xff]  ;;  %v288_v13 = vld [vmem:[%s4665_s12 + $0x48] sm:$0xff] }
  0x15   : > { %337 = vst.msk [vmem:[#allocation2 + $0xc0] sm:$0xff] %vm311_vm1, %v4419_v3  ;;  %338 = vst.msk [vmem:[#allocation2 + $0xc8] sm:$0xff] %vm311_vm1, %v4419_v3  ;;  %v289_v14 = vld [vmem:[%s4665_s12 + $0x50] sm:$0xff]  ;;  %v290_v15 = vld [vmem:[%s4665_s12 + $0x58] sm:$0xff] }
  0x16   : > { %340 = vst.msk [vmem:[#allocation2 + $0xd8] sm:$0xff] %vm311_vm1, %v4419_v3  ;;  %341 = vst.msk [vmem:[#allocation2 + $0xe0] sm:$0xff] %vm311_vm1, %v4419_v3  ;;  %v291_v16 = vld [vmem:[%s4665_s12 + $0x60] sm:$0xff]  ;;  %v292_v17 = vld [vmem:[%s4665_s12 + $0x68] sm:$0xff] }
  0x17   : > { %343 = vst.msk [vmem:[#allocation2 + $0xf0] sm:$0xff] %vm311_vm1, %v4419_v3  ;;  %344 = vst.msk [vmem:[#allocation2 + $0xf8] sm:$0xff] %vm311_vm1, %v4419_v3  ;;  %v293_v18 = vld [vmem:[%s4665_s12 + $0x70] sm:$0xff]  ;;  %v294_v19 = vld [vmem:[%s4665_s12 + $0x78] sm:$0xff] }
  0x18   : > { %346 = vst.msk [vmem:[#allocation2 + $0x108] sm:$0xff] %vm311_vm1, %v4419_v3  ;;  %347 = vst.msk [vmem:[#allocation2 + $0x110] sm:$0xff] %vm311_vm1, %v4419_v3  ;;  %v295_v20 = vld [vmem:[%s4665_s12 + $0x80] sm:$0xff]  ;;  %v296_v21 = vld [vmem:[%s4665_s12 + $0x88] sm:$0xff] }
  0x19   : > { %349 = vst.msk [vmem:[#allocation2 + $0x120] sm:$0xff] %vm311_vm1, %v4419_v3  ;;  %350 = vst.msk [vmem:[#allocation2 + $0x128] sm:$0xff] %vm311_vm1, %v4419_v3  ;;  %v297_v22 = vld [vmem:[%s4665_s12 + $0x90] sm:$0xff]  ;;  %v298_v23 = vld [vmem:[%s4665_s12 + $0x98] sm:$0xff] }
  0x1a   : > { %352 = vst.msk [vmem:[#allocation2 + $0x138] sm:$0xff] %vm311_vm1, %v4419_v3  ;;  %353 = vst.msk [vmem:[#allocation2 + $0x140] sm:$0xff] %vm311_vm1, %v4419_v3  ;;  %v299_v24 = vld [vmem:[%s4665_s12 + $0xa0] sm:$0xff]  ;;  %v300_v25 = vld [vmem:[%s4665_s12 + $0xa8] sm:$0xff] }
  0x1b   : > { %355 = vst.msk [vmem:[#allocation2 + $0x150] sm:$0xff] %vm311_vm1, %v4419_v3  ;;  %356 = vst.msk [vmem:[#allocation2 + $0x158] sm:$0xff] %vm311_vm1, %v4419_v3  ;;  %v301_v26 = vld [vmem:[%s4665_s12 + $0xb0] sm:$0xff]  ;;  %v302_v27 = vld [vmem:[%s4665_s12 + $0xb8] sm:$0xff] }
  0x1c   : > { %358 = vst.msk [vmem:[#allocation2 + $0x168] sm:$0xff] %vm311_vm1, %v4419_v3  ;;  %359 = vst.msk [vmem:[#allocation2 + $0x170] sm:$0xff] %vm311_vm1, %v4419_v3  ;;  %v303_v50 = vld [vmem:[%s4665_s12 + $0xc0] sm:$0xff]  ;;  %v304_v51 = vld [vmem:[%s4665_s12 + $0xc8] sm:$0xff] }
  0x1d   : > { %1801 = vst.msk [vmem:[#allocation3] sm:$0xff] %vm311_vm1, %v4419_v3  ;;  %1802 = vst.msk [vmem:[#allocation3 + $0x8] sm:$0xff] %vm311_vm1, %v4419_v3  ;;  %v305_v52 = vld [vmem:[%s4665_s12 + $0xd0] sm:$0xff]  ;;  %v306_v53 = vld [vmem:[%s4665_s12 + $0xd8] sm:$0xff] }
  0x1e   : > { %1803 = vst.msk [vmem:[#allocation3 + $0x10] sm:$0xff] %vm311_vm1, %v4419_v3  ;;  %1804 = vst.msk [vmem:[#allocation3 + $0x18] sm:$0xff] %vm311_vm1, %v4419_v3  ;;  %v307_v54 = vld [vmem:[%s4665_s12 + $0xe0] sm:$0xff]  ;;  %v308_v55 = vld [vmem:[%s4665_s12 + $0xe8] sm:$0xff] }
  0x1f   : > { %1805 = vst.msk [vmem:[#allocation3 + $0x20] sm:$0xff] %vm311_vm1, %v4419_v3  ;;  %1806 = vst.msk [vmem:[#allocation3 + $0x28] sm:$0xff] %vm311_vm1, %v4419_v3  ;;  %v309_v56 = vld [vmem:[%s4665_s12 + $0xf0] sm:$0xff]  ;;  %v310_v57 = vld [vmem:[%s4665_s12 + $0xf8] sm:$0xff] }
  0x20   : > { %1807 = vst.msk [vmem:[#allocation3 + $0x30] sm:$0xff] %vm311_vm1, %v4419_v3  ;;  %1808 = vst.msk [vmem:[#allocation3 + $0x38] sm:$0xff] %vm311_vm1, %v4419_v3 }
  0x21   : > { %1809 = vst.msk [vmem:[#allocation3 + $0x40] sm:$0xff] %vm311_vm1, %v4419_v3  ;;  %1810 = vst.msk [vmem:[#allocation3 + $0x48] sm:$0xff] %vm311_vm1, %v4419_v3 }
  0x22   : > { %1811 = vst.msk [vmem:[#allocation3 + $0x50] sm:$0xff] %vm311_vm1, %v4419_v3  ;;  %1812 = vst.msk [vmem:[#allocation3 + $0x58] sm:$0xff] %vm311_vm1, %v4419_v3 }
  0x23   : > { %1813 = vst.msk [vmem:[#allocation3 + $0x60] sm:$0xff] %vm311_vm1, %v4419_v3  ;;  %1814 = vst.msk [vmem:[#allocation3 + $0x68] sm:$0xff] %vm311_vm1, %v4419_v3 }
  0x24   : > { %1815 = vst.msk [vmem:[#allocation3 + $0x70] sm:$0xff] %vm311_vm1, %v4419_v3  ;;  %1816 = vst.msk [vmem:[#allocation3 + $0x78] sm:$0xff] %vm311_vm1, %v4419_v3 }
  0x25   : > { %1817 = vst.msk [vmem:[#allocation3 + $0x80] sm:$0xff] %vm311_vm1, %v4419_v3  ;;  %1818 = vst.msk [vmem:[#allocation3 + $0x88] sm:$0xff] %vm311_vm1, %v4419_v3 }
  0x26   : > { %1819 = vst.msk [vmem:[#allocation3 + $0x90] sm:$0xff] %vm311_vm1, %v4419_v3  ;;  %1820 = vst.msk [vmem:[#allocation3 + $0x98] sm:$0xff] %vm311_vm1, %v4419_v3 }
  0x27   : > { %1821 = vst.msk [vmem:[#allocation3 + $0xa0] sm:$0xff] %vm311_vm1, %v4419_v3  ;;  %1822 = vst.msk [vmem:[#allocation3 + $0xa8] sm:$0xff] %vm311_vm1, %v4419_v3 }
  0x28   : > { %1823 = vst.msk [vmem:[#allocation3 + $0xb0] sm:$0xff] %vm311_vm1, %v4419_v3  ;;  %1824 = vst.msk [vmem:[#allocation3 + $0xb8] sm:$0xff] %vm311_vm1, %v4419_v3 }
  0x29   : > { %1825 = vst.msk [vmem:[#allocation3 + $0xc0] sm:$0xff] %vm311_vm1, %v4419_v3  ;;  %1826 = vst.msk [vmem:[#allocation3 + $0xc8] sm:$0xff] %vm311_vm1, %v4419_v3 }
  0x2a   : > { %1827 = vst.msk [vmem:[#allocation3 + $0xd0] sm:$0xff] %vm311_vm1, %v4419_v3  ;;  %1828 = vst.msk [vmem:[#allocation3 + $0xd8] sm:$0xff] %vm311_vm1, %v4419_v3 }
  0x2b   : > { %1829 = vst.msk [vmem:[#allocation3 + $0xe0] sm:$0xff] %vm311_vm1, %v4419_v3  ;;  %1830 = vst.msk [vmem:[#allocation3 + $0xe8] sm:$0xff] %vm311_vm1, %v4419_v3 }
  0x2c   : > { %1831 = vst.msk [vmem:[#allocation3 + $0xf0] sm:$0xff] %vm311_vm1, %v4419_v3  ;;  %1832 = vst.msk [vmem:[#allocation3 + $0xf8] sm:$0xff] %vm311_vm1, %v4419_v3 }
  0x2d   : > { %1833 = vst.msk [vmem:[#allocation3 + $0x100] sm:$0xff] %vm311_vm1, %v4419_v3  ;;  %1834 = vst.msk [vmem:[#allocation3 + $0x108] sm:$0xff] %vm311_vm1, %v4419_v3 }
  0x2e   : > { %1835 = vst.msk [vmem:[#allocation3 + $0x110] sm:$0xff] %vm311_vm1, %v4419_v3  ;;  %1836 = vst.msk [vmem:[#allocation3 + $0x118] sm:$0xff] %vm311_vm1, %v4419_v3 }
  0x2f   : > { %315 = vst.msk [vmem:[#allocation2 + $0x10] sm:$0x3] %vm314_vm2, %v4419_v3  ;;  %318 = vst.msk [vmem:[#allocation2 + $0x28] sm:$0x3] %vm314_vm2, %v4419_v3 }
  0x30   : > { %321 = vst.msk [vmem:[#allocation2 + $0x40] sm:$0x3] %vm314_vm2, %v4419_v3  ;;  %324 = vst.msk [vmem:[#allocation2 + $0x58] sm:$0x3] %vm314_vm2, %v4419_v3 }
  0x31   : > { %327 = vst.msk [vmem:[#allocation2 + $0x70] sm:$0x3] %vm314_vm2, %v4419_v3  ;;  %330 = vst.msk [vmem:[#allocation2 + $0x88] sm:$0x3] %vm314_vm2, %v4419_v3 }
  0x32   : > { %333 = vst.msk [vmem:[#allocation2 + $0xa0] sm:$0x3] %vm314_vm2, %v4419_v3  ;;  %336 = vst.msk [vmem:[#allocation2 + $0xb8] sm:$0x3] %vm314_vm2, %v4419_v3 }
  0x33   : > { %339 = vst.msk [vmem:[#allocation2 + $0xd0] sm:$0x3] %vm314_vm2, %v4419_v3  ;;  %342 = vst.msk [vmem:[#allocation2 + $0xe8] sm:$0x3] %vm314_vm2, %v4419_v3 }
  0x34   : > { %345 = vst.msk [vmem:[#allocation2 + $0x100] sm:$0x3] %vm314_vm2, %v4419_v3  ;;  %348 = vst.msk [vmem:[#allocation2 + $0x118] sm:$0x3] %vm314_vm2, %v4419_v3 }
  0x35   : > { %351 = vst.msk [vmem:[#allocation2 + $0x130] sm:$0x3] %vm314_vm2, %v4419_v3  ;;  %354 = vst.msk [vmem:[#allocation2 + $0x148] sm:$0x3] %vm314_vm2, %v4419_v3 }
  0x36   : > { %357 = vst.msk [vmem:[#allocation2 + $0x160] sm:$0x3] %vm314_vm2, %v4419_v3  ;;  %360 = vst.msk [vmem:[#allocation2 + $0x178] sm:$0x3] %vm314_vm2, %v4419_v3 }
  0x37   : > { %361 = vst.msk [vmem:[#allocation2 + $0x1] sm:$0xff] %vm311_vm1, %v279_v4  ;;  %362 = vst.msk [vmem:[#allocation2 + $0x9] sm:$0xff] %vm311_vm1, %v280_v5 }
  0x38   : > { %363 = vst.msk [vmem:[#allocation2 + $0x19] sm:$0xff] %vm311_vm1, %v281_v6  ;;  %364 = vst.msk [vmem:[#allocation2 + $0x21] sm:$0xff] %vm311_vm1, %v282_v7 }
  0x39   : > { %365 = vst.msk [vmem:[#allocation2 + $0x31] sm:$0xff] %vm311_vm1, %v283_v8  ;;  %366 = vst.msk [vmem:[#allocation2 + $0x39] sm:$0xff] %vm311_vm1, %v284_v9 }
  0x3a   : > { %367 = vst.msk [vmem:[#allocation2 + $0x49] sm:$0xff] %vm311_vm1, %v285_v10  ;;  %368 = vst.msk [vmem:[#allocation2 + $0x51] sm:$0xff] %vm311_vm1, %v286_v11 }
  0x3b   : > { %369 = vst.msk [vmem:[#allocation2 + $0x61] sm:$0xff] %vm311_vm1, %v287_v12  ;;  %370 = vst.msk [vmem:[#allocation2 + $0x69] sm:$0xff] %vm311_vm1, %v288_v13 }
  0x3c   : > { %371 = vst.msk [vmem:[#allocation2 + $0x79] sm:$0xff] %vm311_vm1, %v289_v14  ;;  %372 = vst.msk [vmem:[#allocation2 + $0x81] sm:$0xff] %vm311_vm1, %v290_v15 }
  0x3d   : > { %373 = vst.msk [vmem:[#allocation2 + $0x91] sm:$0xff] %vm311_vm1, %v291_v16  ;;  %374 = vst.msk [vmem:[#allocation2 + $0x99] sm:$0xff] %vm311_vm1, %v292_v17 }
  0x3e   : > { %375 = vst.msk [vmem:[#allocation2 + $0xa9] sm:$0xff] %vm311_vm1, %v293_v18  ;;  %376 = vst.msk [vmem:[#allocation2 + $0xb1] sm:$0xff] %vm311_vm1, %v294_v19  ;;  %v426_v28 = vld [vmem:[#allocation2 + $0x1] sm:$0xff]  ;;  %v427_v30 = vld [vmem:[#allocation2 + $0x9] sm:$0xff] }
  0x3f   : > { %377 = vst.msk [vmem:[#allocation2 + $0xc1] sm:$0xff] %vm311_vm1, %v295_v20  ;;  %378 = vst.msk [vmem:[#allocation2 + $0xc9] sm:$0xff] %vm311_vm1, %v296_v21  ;;  %v393_v29 = vld [vmem:[#allocation2] sm:$0xff]  ;;  %3848 = vmatprep.mubr.msk.f32.mxu0 %vm311_vm1, %v426_v28  ;;  %v394_v31 = vld [vmem:[#allocation2 + $0x8] sm:$0xff] }
  0x40   : > { %379 = vst.msk [vmem:[#allocation2 + $0xd9] sm:$0xff] %vm311_vm1, %v297_v22  ;;  %380 = vst.msk [vmem:[#allocation2 + $0xe1] sm:$0xff] %vm311_vm1, %v298_v23  ;;  %3898 = vmatprep.mubr.msk.f32.mxu1 %vm311_vm1, %v393_v29  ;;  %v428_v32 = vld [vmem:[#allocation2 + $0x19] sm:$0xff]  ;;  %3849 = vmatmul.mubr.msk.f32.vlgmr.msra.gmra.mxu0 %vm311_vm1, %v427_v30  ;;  %v429_v34 = vld [vmem:[#allocation2 + $0x21] sm:$0xff] }
  0x41   : > { %381 = vst.msk [vmem:[#allocation2 + $0xf1] sm:$0xff] %vm311_vm1, %v299_v24  ;;  %382 = vst.msk [vmem:[#allocation2 + $0xf9] sm:$0xff] %vm311_vm1, %v300_v25  ;;  %v395_v33 = vld [vmem:[#allocation2 + $0x18] sm:$0xff]  ;;  %3899 = vmatmul.mubr.msk.f32.vlgmr.msra.gmra.mxu1 %vm311_vm1, %v394_v31  ;;  %3947 = vmatpush3.msk.msra.mxu0 %vm556_vm0, %v4482_v2  ;;  %v396_v35 = vld [vmem:[#allocation2 + $0x20] sm:$0xff] }
  0x42   : > { %383 = vst.msk [vmem:[#allocation2 + $0x109] sm:$0xff] %vm311_vm1, %v301_v26  ;;  %384 = vst.msk [vmem:[#allocation2 + $0x111] sm:$0xff] %vm311_vm1, %v302_v27  ;;  %3851 = vmatprep.mubr.msk.f32.mxu0 %vm311_vm1, %v428_v32  ;;  %3901 = vmatprep.mubr.msk.f32.mxu1 %vm311_vm1, %v395_v33  ;;  %v430_v36 = vld [vmem:[#allocation2 + $0x31] sm:$0xff]  ;;  %v431_v38 = vld [vmem:[#allocation2 + $0x39] sm:$0xff] }
  0x43   : > { %v397_v37 = vld [vmem:[#allocation2 + $0x30] sm:$0xff]  ;;  %v398_v39 = vld [vmem:[#allocation2 + $0x38] sm:$0xff]  ;;  %v399_v41 = vld [vmem:[#allocation2 + $0x48] sm:$0xff]  ;;  %385 = vst.msk [vmem:[#allocation2 + $0x121] sm:$0xff] %vm311_vm1, %v303_v50 }
  0x44   : > { %3852 = vmatmul.mubr.msk.f32.gmra.mxu0 %vm311_vm1, %v429_v34  ;;  %v432_v40 = vld [vmem:[#allocation2 + $0x49] sm:$0xff]  ;;  %v433_v42 = vld [vmem:[#allocation2 + $0x51] sm:$0xff]  ;;  %v434_v44 = vld [vmem:[#allocation2 + $0x61] sm:$0xff]  ;;  %386 = vst.msk [vmem:[#allocation2 + $0x129] sm:$0xff] %vm311_vm1, %v304_v51 }
  0x45   : > { %3902 = vmatmul.mubr.msk.f32.gmra.mxu1 %vm311_vm1, %v396_v35  ;;  %3854 = vmatprep.mubr.msk.f32.mxu0 %vm311_vm1, %v430_v36  ;;  %v400_v43 = vld [vmem:[#allocation2 + $0x50] sm:$0xff]  ;;  %v401_v45 = vld [vmem:[#allocation2 + $0x60] sm:$0xff]  ;;  %v402_v47 = vld [vmem:[#allocation2 + $0x68] sm:$0xff]  ;;  %387 = vst.msk [vmem:[#allocation2 + $0x139] sm:$0xff] %vm311_vm1, %v305_v52 }
  0x46   : > { %3904 = vmatprep.mubr.msk.f32.mxu1 %vm311_vm1, %v397_v37  ;;  %v435_v46 = vld [vmem:[#allocation2 + $0x69] sm:$0xff]  ;;  %v436_v48 = vld [vmem:[#allocation2 + $0x79] sm:$0xff]  ;;  %388 = vst.msk [vmem:[#allocation2 + $0x141] sm:$0xff] %vm311_vm1, %v306_v53  ;;  %389 = vst.msk [vmem:[#allocation2 + $0x151] sm:$0xff] %vm311_vm1, %v307_v54 }
  0x47   : > { %v403_v49 = vld [vmem:[#allocation2 + $0x78] sm:$0xff]  ;;  %390 = vst.msk [vmem:[#allocation2 + $0x159] sm:$0xff] %vm311_vm1, %v308_v55  ;;  %v437_v58 = vld [vmem:[#allocation2 + $0x81] sm:$0xff]  ;;  %391 = vst.msk [vmem:[#allocation2 + $0x169] sm:$0xff] %vm311_vm1, %v309_v56 }
  0x48   : > { %3855 = vmatmul.mubr.msk.f32.gmra.mxu0 %vm311_vm1, %v431_v38  ;;  %v404_v59 = vld [vmem:[#allocation2 + $0x80] sm:$0xff]  ;;  %392 = vst.msk [vmem:[#allocation2 + $0x171] sm:$0xff] %vm311_vm1, %v310_v57  ;;  %v438_v60 = vld [vmem:[#allocation2 + $0x91] sm:$0xff]  ;;  %v440_v0 = vld [vmem:[#allocation2 + $0xa9] sm:$0xff] }
  0x49   : > { %3905 = vmatmul.mubr.msk.f32.gmra.mxu1 %vm311_vm1, %v398_v39  ;;  %3857 = vmatprep.mubr.msk.f32.mxu0 %vm311_vm1, %v432_v40  ;;  %v405_v61 = vld [vmem:[#allocation2 + $0x90] sm:$0xff]  ;;  %v439_v62 = vld [vmem:[#allocation2 + $0x99] sm:$0xff]  ;;  %v407_v1 = vld [vmem:[#allocation2 + $0xa8] sm:$0xff] }
  0x4a   : > { %3907 = vmatprep.mubr.msk.f32.mxu1 %vm311_vm1, %v399_v41  ;;  %v406_v63 = vld [vmem:[#allocation2 + $0x98] sm:$0xff]  ;;  %v408_v3 = vld [vmem:[#allocation2 + $0xb0] sm:$0xff]  ;;  %v442_v4 = vld [vmem:[#allocation2 + $0xc1] sm:$0xff] }
  0x4b   : > { %v441_v2 = vld [vmem:[#allocation2 + $0xb1] sm:$0xff]  ;;  %v409_v5 = vld [vmem:[#allocation2 + $0xc0] sm:$0xff]  ;;  %v443_v6 = vld [vmem:[#allocation2 + $0xc9] sm:$0xff] }
  0x4c   : > { %3858 = vmatmul.mubr.msk.f32.gmra.mxu0 %vm311_vm1, %v433_v42  ;;  %v410_v7 = vld [vmem:[#allocation2 + $0xc8] sm:$0xff]  ;;  %v444_v8 = vld [vmem:[#allocation2 + $0xd9] sm:$0xff]  ;;  %v446_v12 = vld [vmem:[#allocation2 + $0xf1] sm:$0xff] }
  0x4d   : > { %3908 = vmatmul.mubr.msk.f32.gmra.mxu1 %vm311_vm1, %v400_v43  ;;  %3860 = vmatprep.mubr.msk.f32.mxu0 %vm311_vm1, %v434_v44  ;;  %v411_v9 = vld [vmem:[#allocation2 + $0xd8] sm:$0xff]  ;;  %v445_v10 = vld [vmem:[#allocation2 + $0xe1] sm:$0xff]  ;;  %v413_v13 = vld [vmem:[#allocation2 + $0xf0] sm:$0xff] }
  0x4e   : > { %3910 = vmatprep.mubr.msk.f32.mxu1 %vm311_vm1, %v401_v45  ;;  %v412_v11 = vld [vmem:[#allocation2 + $0xe0] sm:$0xff]  ;;  %v414_v15 = vld [vmem:[#allocation2 + $0xf8] sm:$0xff]  ;;  %v448_v16 = vld [vmem:[#allocation2 + $0x109] sm:$0xff] }
  0x4f   : > { %v447_v14 = vld [vmem:[#allocation2 + $0xf9] sm:$0xff]  ;;  %v415_v17 = vld [vmem:[#allocation2 + $0x108] sm:$0xff]  ;;  %v449_v18 = vld [vmem:[#allocation2 + $0x111] sm:$0xff] }
  0x50   : > { %3861 = vmatmul.mubr.msk.f32.gmra.mxu0 %vm311_vm1, %v435_v46  ;;  %v416_v19 = vld [vmem:[#allocation2 + $0x110] sm:$0xff]  ;;  %v450_v20 = vld [vmem:[#allocation2 + $0x121] sm:$0xff]  ;;  %v452_v24 = vld [vmem:[#allocation2 + $0x139] sm:$0xff] }
  0x51   : > { %3911 = vmatmul.mubr.msk.f32.gmra.mxu1 %vm311_vm1, %v402_v47  ;;  %3863 = vmatprep.mubr.msk.f32.mxu0 %vm311_vm1, %v436_v48  ;;  %v417_v21 = vld [vmem:[#allocation2 + $0x120] sm:$0xff]  ;;  %v451_v22 = vld [vmem:[#allocation2 + $0x129] sm:$0xff]  ;;  %v419_v25 = vld [vmem:[#allocation2 + $0x138] sm:$0xff] }
  0x52   : > { %3913 = vmatprep.mubr.msk.f32.mxu1 %vm311_vm1, %v403_v49  ;;  %v418_v23 = vld [vmem:[#allocation2 + $0x128] sm:$0xff]  ;;  %v420_v27 = vld [vmem:[#allocation2 + $0x140] sm:$0xff]  ;;  %v454_v28 = vld [vmem:[#allocation2 + $0x151] sm:$0xff] }
  0x53   : > { %v453_v26 = vld [vmem:[#allocation2 + $0x141] sm:$0xff]  ;;  %v421_v29 = vld [vmem:[#allocation2 + $0x150] sm:$0xff]  ;;  %v455_v30 = vld [vmem:[#allocation2 + $0x159] sm:$0xff] }
  0x54   : > { %3864 = vmatmul.mubr.msk.f32.gmra.mxu0 %vm311_vm1, %v437_v58  ;;  %v422_v31 = vld [vmem:[#allocation2 + $0x158] sm:$0xff]  ;;  %v456_v32 = vld [vmem:[#allocation2 + $0x169] sm:$0xff] }
  0x55   : > { %3914 = vmatmul.mubr.msk.f32.gmra.mxu1 %vm311_vm1, %v404_v59  ;;  %3866 = vmatprep.mubr.msk.f32.mxu0 %vm311_vm1, %v438_v60  ;;  %v423_v33 = vld [vmem:[#allocation2 + $0x168] sm:$0xff]  ;;  %v457_v34 = vld [vmem:[#allocation2 + $0x171] sm:$0xff]  ;;  %v1111_v38 = vld [vmem:[#allocation2 + $0x1a] sm:$0xff] }
  0x56   : > { %3916 = vmatprep.mubr.msk.f32.mxu1 %vm311_vm1, %v405_v61  ;;  %v424_v35 = vld [vmem:[#allocation2 + $0x170] sm:$0xff]  ;;  %v1109_v36 = vld [vmem:[#allocation2 + $0x2] sm:$0xff]  ;;  %v1114_v41 = vld [vmem:[#allocation2 + $0x3a] sm:$0xff] }
  0x57   : > { %v1110_v37 = vld [vmem:[#allocation2 + $0xa] sm:$0xff]  ;;  %v1112_v39 = vld [vmem:[#allocation2 + $0x22] sm:$0xff]  ;;  %v1113_v40 = vld [vmem:[#allocation2 + $0x32] sm:$0xff] }
  0x58   : > { %3867 = vmatmul.mubr.msk.f32.gmra.mxu0 %vm311_vm1, %v439_v62  ;;  %v1115_v42 = vld [vmem:[#allocation2 + $0x4a] sm:$0xff]  ;;  %v1116_v43 = vld [vmem:[#allocation2 + $0x52] sm:$0xff]  ;;  %v1117_v44 = vld [vmem:[#allocation2 + $0x62] sm:$0xff] }
  0x59   : > { %3917 = vmatmul.mubr.msk.f32.gmra.mxu1 %vm311_vm1, %v406_v63  ;;  %3869 = vmatprep.mubr.msk.f32.mxu0 %vm311_vm1, %v440_v0  ;;  %v1118_v45 = vld [vmem:[#allocation2 + $0x6a] sm:$0xff]  ;;  %v1119_v46 = vld [vmem:[#allocation2 + $0x7a] sm:$0xff]  ;;  %v1120_v47 = vld [vmem:[#allocation2 + $0x82] sm:$0xff] }
  0x5a   : > { %3919 = vmatprep.mubr.msk.f32.mxu1 %vm311_vm1, %v407_v1  ;;  %v1121_v48 = vld [vmem:[#allocation2 + $0x92] sm:$0xff]  ;;  %v1122_v49 = vld [vmem:[#allocation2 + $0x9a] sm:$0xff]  ;;  %v1123_v50 = vld [vmem:[#allocation2 + $0xaa] sm:$0xff] }
  0x5b   : > { %v1124_v51 = vld [vmem:[#allocation2 + $0xb2] sm:$0xff]  ;;  %v1125_v52 = vld [vmem:[#allocation2 + $0xc2] sm:$0xff]  ;;  %v1126_v53 = vld [vmem:[#allocation2 + $0xca] sm:$0xff] }
  0x5c   : > { %3870 = vmatmul.mubr.msk.f32.gmra.mxu0 %vm311_vm1, %v441_v2  ;;  %v1127_v54 = vld [vmem:[#allocation2 + $0xda] sm:$0xff]  ;;  %v1128_v55 = vld [vmem:[#allocation2 + $0xe2] sm:$0xff]  ;;  %v1129_v56 = vld [vmem:[#allocation2 + $0xf2] sm:$0xff] }
  0x5d   : > { %3920 = vmatmul.mubr.msk.f32.gmra.mxu1 %vm311_vm1, %v408_v3  ;;  %3872 = vmatprep.mubr.msk.f32.mxu0 %vm311_vm1, %v442_v4  ;;  %v1130_v57 = vld [vmem:[#allocation2 + $0xfa] sm:$0xff]  ;;  %v1131_v58 = vld [vmem:[#allocation2 + $0x10a] sm:$0xff]  ;;  %v1132_v59 = vld [vmem:[#allocation2 + $0x112] sm:$0xff] }
  0x5e   : > { %3922 = vmatprep.mubr.msk.f32.mxu1 %vm311_vm1, %v409_v5  ;;  %v1133_v60 = vld [vmem:[#allocation2 + $0x122] sm:$0xff]  ;;  %v1134_v61 = vld [vmem:[#allocation2 + $0x12a] sm:$0xff]  ;;  %v1135_v62 = vld [vmem:[#allocation2 + $0x13a] sm:$0xff] }
  0x5f   : > { %v1136_v63 = vld [vmem:[#allocation2 + $0x142] sm:$0xff]  ;;  %v1137_v0 = vld [vmem:[#allocation2 + $0x152] sm:$0xff]  ;;  %v1138_v2 = vld [vmem:[#allocation2 + $0x15a] sm:$0xff] }
  0x60   : > { %3873 = vmatmul.mubr.msk.f32.gmra.mxu0 %vm311_vm1, %v443_v6  ;;  %v3509_v1 = vld [vmem:[%s5942_s4 + $0x4] sm:$0xf]  ;;  %v1139_v3 = vld [vmem:[#allocation2 + $0x16a] sm:$0xff]  ;;  %v1140_v4 = vld [vmem:[#allocation2 + $0x172] sm:$0xff] }
  0x61   : > { %3923 = vmatmul.mubr.msk.f32.gmra.mxu1 %vm311_vm1, %v410_v7  ;;  %3875 = vmatprep.mubr.msk.f32.mxu0 %vm311_vm1, %v444_v8  ;;  %v1902_v5 = vld [vmem:[%s5942_s4] sm:$0xf]  ;;  %v1871_v7 = vld [vmem:[#allocation3 + $0x8] sm:$0xff] }
  0x62   : > { %3925 = vmatprep.mubr.msk.f32.mxu1 %vm311_vm1, %v411_v9  ;;  %3996 = vmatprep.subr.msk.mxu1 %vm556_vm0, %v3509_v1  ;;  %v1870_v6 = vld [vmem:[#allocation3] sm:$0xff] }
  0x63   : > { %3997 = vmatpush3.msk.msra.mxu1 %vm556_vm0, %v3509_v1  ;;  %4046 = vmatprep.subr.msk.mxu0 %vm556_vm0, %v1902_v5 }
  0x64   : > { %3876 = vmatmul.mubr.msk.f32.gmra.mxu0 %vm311_vm1, %v445_v10 }
  0x65   : > { %3926 = vmatmul.mubr.msk.f32.gmra.mxu1 %vm311_vm1, %v412_v11  ;;  %3878 = vmatprep.mubr.msk.f32.mxu0 %vm311_vm1, %v446_v12 }
  0x66   : > { %3928 = vmatprep.mubr.msk.f32.mxu1 %vm311_vm1, %v413_v13 }
  0x68   : > { %3879 = vmatmul.mubr.msk.f32.gmra.mxu0 %vm311_vm1, %v447_v14 }
  0x69   : > { %3929 = vmatmul.mubr.msk.f32.gmra.mxu1 %vm311_vm1, %v414_v15  ;;  %3881 = vmatprep.mubr.msk.f32.mxu0 %vm311_vm1, %v448_v16 }
  0x6a   : > { %3931 = vmatprep.mubr.msk.f32.mxu1 %vm311_vm1, %v415_v17 }
  0x6c   : > { %3882 = vmatmul.mubr.msk.f32.gmra.mxu0 %vm311_vm1, %v449_v18 }
  0x6d   : > { %3932 = vmatmul.mubr.msk.f32.gmra.mxu1 %vm311_vm1, %v416_v19  ;;  %3884 = vmatprep.mubr.msk.f32.mxu0 %vm311_vm1, %v450_v20 }
  0x6e   : > { %3934 = vmatprep.mubr.msk.f32.mxu1 %vm311_vm1, %v417_v21 }
  0x70   : > { %3885 = vmatmul.mubr.msk.f32.gmra.mxu0 %vm311_vm1, %v451_v22 }
  0x71   : > { %3935 = vmatmul.mubr.msk.f32.gmra.mxu1 %vm311_vm1, %v418_v23  ;;  %3887 = vmatprep.mubr.msk.f32.mxu0 %vm311_vm1, %v452_v24 }
  0x72   : > { %3937 = vmatprep.mubr.msk.f32.mxu1 %vm311_vm1, %v419_v25 }
  0x74   : > { %3888 = vmatmul.mubr.msk.f32.gmra.mxu0 %vm311_vm1, %v453_v26 }
  0x75   : > { %3938 = vmatmul.mubr.msk.f32.gmra.mxu1 %vm311_vm1, %v420_v27  ;;  %3890 = vmatprep.mubr.msk.f32.mxu0 %vm311_vm1, %v454_v28 }
  0x76   : > { %3940 = vmatprep.mubr.msk.f32.mxu1 %vm311_vm1, %v421_v29 }
  0x78   : > { %3891 = vmatmul.mubr.msk.f32.gmra.mxu0 %vm311_vm1, %v455_v30 }
  0x79   : > { %3941 = vmatmul.mubr.msk.f32.gmra.mxu1 %vm311_vm1, %v422_v31  ;;  %3893 = vmatprep.mubr.msk.f32.mxu0 %vm311_vm1, %v456_v32 }
  0x7a   : > { %3943 = vmatprep.mubr.msk.f32.mxu1 %vm311_vm1, %v423_v33 }
  0x7c   : > { %3894 = vmatmul.mubr.msk.f32.gmra.mxu0 %vm311_vm1, %v457_v34 }
  0x7d   : > { %3944 = vmatmul.mubr.msk.f32.gmra.mxu1 %vm311_vm1, %v424_v35  ;;  %3948 = vmatprep.mubr.msk.f32.mxu0 %vm311_vm1, %v1109_v36  ;;  %v4882_v35 = vld [vmem:[%s5942_s4 + $0x8] sm:$0xf] }
  0x7e   : > { %5947 = vst [vmem:[#allocation4_spill] sm:$0xff] %v4882_v35  ;;  %4096 = vmatprep.subr.msk.mxu1 %vm556_vm0, %v4882_v35 }
  0x80   : > { %3949 = vmatmul.mubr.msk.f32.vlgmr.msra.gmra.mxu0 %vm311_vm1, %v1110_v37 }
  0x81   : > { %3951 = vmatprep.mubr.msk.f32.mxu0 %vm311_vm1, %v1111_v38  ;;  %4047 = vmatpush3.msk.msra.mxu0 %vm556_vm0, %v1902_v5 }
  0x84   : > { %3952 = vmatmul.mubr.msk.f32.gmra.mxu0 %vm311_vm1, %v1112_v39 }
  0x85   : > { %3954 = vmatprep.mubr.msk.f32.mxu0 %vm311_vm1, %v1113_v40 }
  0x88   : > { %3955 = vmatmul.mubr.msk.f32.gmra.mxu0 %vm311_vm1, %v1114_v41 }
  0x89   : > { %3957 = vmatprep.mubr.msk.f32.mxu0 %vm311_vm1, %v1115_v42 }
  0x8c   : > { %3958 = vmatmul.mubr.msk.f32.gmra.mxu0 %vm311_vm1, %v1116_v43 }
  0x8d   : > { %3960 = vmatprep.mubr.msk.f32.mxu0 %vm311_vm1, %v1117_v44 }
  0x90   : > { %3961 = vmatmul.mubr.msk.f32.gmra.mxu0 %vm311_vm1, %v1118_v45 }
  0x91   : > { %3963 = vmatprep.mubr.msk.f32.mxu0 %vm311_vm1, %v1119_v46 }
  0x94   : > { %3964 = vmatmul.mubr.msk.f32.gmra.mxu0 %vm311_vm1, %v1120_v47 }
  0x95   : > { %3966 = vmatprep.mubr.msk.f32.mxu0 %vm311_vm1, %v1121_v48 }
  0x98   : > { %3967 = vmatmul.mubr.msk.f32.gmra.mxu0 %vm311_vm1, %v1122_v49 }
  0x99   : > { %3969 = vmatprep.mubr.msk.f32.mxu0 %vm311_vm1, %v1123_v50 }
  0x9c   : > { %3970 = vmatmul.mubr.msk.f32.gmra.mxu0 %vm311_vm1, %v1124_v51 }
  0x9d   : > { %3972 = vmatprep.mubr.msk.f32.mxu0 %vm311_vm1, %v1125_v52 }
  0xa0   : > { %3973 = vmatmul.mubr.msk.f32.gmra.mxu0 %vm311_vm1, %v1126_v53 }
  0xa1   : > { %3975 = vmatprep.mubr.msk.f32.mxu0 %vm311_vm1, %v1127_v54 }
  0xa4   : > { %3976 = vmatmul.mubr.msk.f32.gmra.mxu0 %vm311_vm1, %v1128_v55 }
  0xa5   : > { %3978 = vmatprep.mubr.msk.f32.mxu0 %vm311_vm1, %v1129_v56 }
  0xa8   : > { %3979 = vmatmul.mubr.msk.f32.gmra.mxu0 %vm311_vm1, %v1130_v57 }
  0xa9   : > { %3981 = vmatprep.mubr.msk.f32.mxu0 %vm311_vm1, %v1131_v58 }
  0xac   : > { %3982 = vmatmul.mubr.msk.f32.gmra.mxu0 %vm311_vm1, %v1132_v59 }
  0xad   : > { %3984 = vmatprep.mubr.msk.f32.mxu0 %vm311_vm1, %v1133_v60 }
  0xb0   : > { %3985 = vmatmul.mubr.msk.f32.gmra.mxu0 %vm311_vm1, %v1134_v61 }
  0xb1   : > { %3987 = vmatprep.mubr.msk.f32.mxu0 %vm311_vm1, %v1135_v62 }
  0xb4   : > { %3988 = vmatmul.mubr.msk.f32.gmra.mxu0 %vm311_vm1, %v1136_v63 }
  0xb5   : > { %3990 = vmatprep.mubr.msk.f32.mxu0 %vm311_vm1, %v1137_v0  ;;  %v4941_v0 = vld [vmem:[%s5940_s2] ss:$0 sm:$0xff] }
  0xb8   : > { %3991 = vmatmul.mubr.msk.f32.gmra.mxu0 %vm311_vm1, %v1138_v2 }
  0xb9   : > { %3993 = vmatprep.mubr.msk.f32.mxu0 %vm311_vm1, %v1139_v3  ;;  %v4946_v3 = vld [vmem:[%s5941_s3] ss:$0 sm:$0xff] }
  0xbc   : > { %3994 = vmatmul.mubr.msk.f32.gmra.mxu0 %vm311_vm1, %v1140_v4 }
  0xbd   : > { %4048 = vmatprep.mubr.msk.f32.mxu0 %vm311_vm1, %v1870_v6 }
  0xc0   : > { %4049 = vmatmul.mubr.msk.f32.vlgmr.msra.gmra.mxu0 %vm311_vm1, %v1871_v7 }
 0x100   : > { %v3850_v8 = vpop.f32.mrf.mxu0 }
 0x101   : > { %v3900_v9 = vpop.f32.mrf.mxu1 }
 0x102   : > { %v626_v10 = vpop.f32.mrf.mxu0  ;;  %v956_v61 = vadd.f32 %v3900_v9, %v3850_v8 }
 0x103   : > { %v950_v11 = vpop.f32.mrf.mxu1 }
 0x104   : > { %v3853_v12 = vpop.f32.mrf.mxu0  ;;  %v951_v1 = vadd.f32 %v950_v11, %v626_v10 }
 0x105   : > { %v3903_v13 = vpop.f32.mrf.mxu1 }
 0x106   : > { %v636_v14 = vpop.f32.mrf.mxu0  ;;  %v966_v5 = vadd.f32 %v3903_v13, %v3853_v12 }
 0x107   : > { %v960_v15 = vpop.f32.mrf.mxu1 }
 0x108   : > { %v4841_v16 = vpop.f32.mrf.mxu0 }
 0x109   : > { %v4843_v17 = vpop.f32.mrf.mxu1 }
 0x10a   : > { %v4845_v18 = vpop.f32.mrf.mxu0 }
 0x10b   : > { %v4847_v19 = vpop.f32.mrf.mxu1 }
 0x10c   : > { %v4849_v20 = vpop.f32.mrf.mxu0 }
 0x10d   : > { %v4851_v21 = vpop.f32.mrf.mxu1 }
 0x10e   : > { %v4853_v22 = vpop.f32.mrf.mxu0 }
 0x10f   : > { %v4855_v23 = vpop.f32.mrf.mxu1 }
 0x110   : > { %v4857_v24 = vpop.f32.mrf.mxu0 }
 0x111   : > { %v4859_v25 = vpop.f32.mrf.mxu1 }
 0x112   : > { %v4861_v26 = vpop.f32.mrf.mxu0 }
 0x113   : > { %v4863_v27 = vpop.f32.mrf.mxu1 }
 0x114   : > { %v4865_v28 = vpop.f32.mrf.mxu0 }
 0x115   : > { %v4869_v30 = vpop.f32.mrf.mxu1 }
 0x116   : > { %v4867_v29 = vpop.f32.mrf.mxu0 }
 0x117   : > { %v4875_v33 = vpop.f32.mrf.mxu1 }
 0x118   : > { %v4871_v31 = vpop.f32.mrf.mxu0 }
 0x119   : > { %v4888_v37 = vpop.f32.mrf.mxu1 }
 0x11a   : > { %v4873_v32 = vpop.f32.mrf.mxu0 }
 0x11b   : > { %v4894_v40 = vpop.f32.mrf.mxu1 }
 0x11c   : > { %v4877_v34 = vpop.f32.mrf.mxu0 }
 0x11d   : > { %v4900_v43 = vpop.f32.mrf.mxu1 }
 0x11e   : > { %v4886_v36 = vpop.f32.mrf.mxu0 }
 0x11f   : > { %v4906_v46 = vpop.f32.mrf.mxu1 }
 0x120   : > { %v4890_v38 = vpop.f32.mrf.mxu0 }
 0x121   : > { %v4912_v49 = vpop.f32.mrf.mxu1 }
 0x122   : > { %v4892_v39 = vpop.f32.mrf.mxu0 }
 0x123   : > { %v4918_v52 = vpop.f32.mrf.mxu1 }
 0x124   : > { %v4896_v41 = vpop.f32.mrf.mxu0 }
 0x125   : > { %v4924_v55 = vpop.f32.mrf.mxu1 }
 0x126   : > { %v4898_v42 = vpop.f32.mrf.mxu0 }
 0x127   : > { %v4930_v58 = vpop.f32.mrf.mxu1 }
 0x128   : > { %v4902_v44 = vpop.f32.mrf.mxu0 }
 0x129   : > { %v4936_v62 = vpop.f32.mrf.mxu1 }
 0x12a   : > { %v4904_v45 = vpop.f32.mrf.mxu0 }
 0x12b   : > { %v4948_v6 = vpop.f32.mrf.mxu1 }
 0x12c   : > { %v4908_v47 = vpop.f32.mrf.mxu0 }
 0x12e   : > { %v4910_v48 = vpop.f32.mrf.mxu0 }
 0x130   : > { %v4914_v50 = vpop.f32.mrf.mxu0 }
 0x132   : > { %v4916_v51 = vpop.f32.mrf.mxu0 }
 0x134   : > { %v4920_v53 = vpop.f32.mrf.mxu0 }
 0x136   : > { %v4922_v54 = vpop.f32.mrf.mxu0 }
 0x138   : > { %v4926_v56 = vpop.f32.mrf.mxu0 }
 0x13a   : > { %v4928_v57 = vpop.f32.mrf.mxu0 }
 0x13c   : > { %v4932_v59 = vpop.f32.mrf.mxu0 }
 0x13d   : > { %5948 = vst [vmem:[#allocation5_spill] sm:$0xff] %v4932_v59 }
 0x13e   : > { %v4934_v60 = vpop.f32.mrf.mxu0 }
 0x13f   : > { %5949 = vst [vmem:[#allocation6_spill] sm:$0xff] %v4934_v60  ;;  %v961_v60 = vadd.f32 %v960_v15, %v636_v14  ;;  %v976_v14 = vadd.f32 %v4843_v17, %v4841_v16  ;;  %v971_v15 = vadd.f32 %v4847_v19, %v4845_v18  ;;  %v981_v19 = vadd.f32 %v4855_v23, %v4853_v22 }
 0x140   : > { %v3950_v63 = vpop.f32.mrf.mxu0 }
 0x141   : > { %v1468_v2 = vadd.f32 %v3950_v63, %v956_v61  ;;  %v4955_v63 = vpop.f32.mrf.mxu1 }
 0x142   : > { %v1308_v4 = vpop.f32.mrf.mxu0 }
 0x143   : > { %v1507_v7 = vmul.f32 %v4941_v0, %v1468_v2  ;;  %v1467_v8 = vadd.f32 %v1308_v4, %v951_v1 }
 0x144   : > { %v3953_v9 = vpop.f32.mrf.mxu0 }
 0x145   : > { %v4952_v35 = vadd.f32 %v4946_v3, %v1507_v7  ;;  %v1506_v10 = vmul.f32 %v4941_v0, %v1467_v8  ;;  %v1470_v11 = vadd.f32 %v3953_v9, %v966_v5  ;;  %v986_v8 = vadd.f32 %v4851_v21, %v4849_v20 }
 0x146   : > { %v1318_v61 = vpop.f32.mrf.mxu0 }
 0x147   : > { %v3478_v59 = vmul.f32 -1.442695, %v4952_v35  ;;  %v4959_v12 = vadd.f32 %v4946_v3, %v1506_v10  ;;  %v1509_v13 = vmul.f32 %v4941_v0, %v1470_v11  ;;  %v1469_v2 = vadd.f32 %v1318_v61, %v961_v60  ;;  %v4973_v10 = vpop.f32.mrf.mxu1 }
 0x148   : > { %v3956_v1 = vpop.f32.mrf.mxu0 }
 0x149   : > { %4155 = vpow2.f32 %v3478_v59  ;;  %v3477_v4 = vmul.f32 -1.442695, %v4959_v12  ;;  %v4968_v5 = vadd.f32 %v4946_v3, %v1509_v13  ;;  %v1508_v7 = vmul.f32 %v4941_v0, %v1469_v2 }
 0x14a   : > { %v1472_v9 = vadd.f32 %v3956_v1, %v976_v14  ;;  %v1328_v60 = vpop.f32.mrf.mxu0  ;;  %v996_v13 = vadd.f32 %v4859_v25, %v4857_v24  ;;  %v1001_v24 = vadd.f32 %v4875_v33, %v4867_v29 }
 0x14b   : > { %4157 = vpow2.f32 %v3477_v4  ;;  %v3480_v16 = vmul.f32 -1.442695, %v4968_v5  ;;  %v4977_v17 = vadd.f32 %v4946_v3, %v1508_v7  ;;  %v1471_v18 = vadd.f32 %v1328_v60, %v971_v15  ;;  %v4989_v15 = vpop.f32.mrf.mxu1 }
 0x14c   : > { %v1511_v59 = vmul.f32 %v4941_v0, %v1472_v9  ;;  %v3959_v11 = vpop.f32.mrf.mxu0  ;;  %v991_v4 = vadd.f32 %v4863_v27, %v4861_v26  ;;  %v1006_v7 = vadd.f32 %v4869_v30, %v4865_v28  ;;  %v1016_v26 = vadd.f32 %v4888_v37, %v4871_v31 }
 0x14d   : > { %4159 = vpow2.f32 %v3480_v16  ;;  %v3479_v20 = vmul.f32 -1.442695, %v4977_v17  ;;  %v1510_v21 = vmul.f32 %v4941_v0, %v1471_v18  ;;  %v1474_v61 = vadd.f32 %v3959_v11, %v986_v8  ;;  %v1070_v30 = vpop.f32.mrf.mxu1 }
 0x14e   : > { %v4987_v2 = vadd.f32 %v4946_v3, %v1511_v59  ;;  %v1338_v14 = vpop.f32.mrf.mxu0  ;;  %v1011_v27 = vadd.f32 %v4894_v40, %v4873_v32  ;;  %v1026_v28 = vadd.f32 %v4900_v43, %v4877_v34  ;;  %v1021_v31 = vadd.f32 %v4906_v46, %v4886_v36 }
 0x14f   : > { %4161 = vpow2.f32 %v3479_v20  ;;  %v4992_v22 = vadd.f32 %v4946_v3, %v1510_v21  ;;  %v1513_v23 = vmul.f32 %v4941_v0, %v1474_v61  ;;  %v1473_v1 = vadd.f32 %v1338_v14, %v981_v19 }
 0x150   : > { %v3482_v25 = vmul.f32 -1.442695, %v4987_v2  ;;  %v3962_v8 = vpop.f32.mrf.mxu0  ;;  %v5022_v32 = vadd.f32 %v4912_v49, %v4890_v38  ;;  %v5026_v34 = vadd.f32 %v4918_v52, %v4892_v39  ;;  %v5034_v36 = vadd.f32 %v4924_v55, %v4896_v41  ;;  %v3939_v52 = vpop.f32.mrf.mxu1 }
 0x151   : > { %v3481_v9 = vmul.f32 -1.442695, %v4992_v22  ;;  %v5004_v60 = vadd.f32 %v4946_v3, %v1513_v23  ;;  %v1512_v16 = vmul.f32 %v4941_v0, %v1473_v1  ;;  %v1476_v18 = vadd.f32 %v3962_v8, %v996_v13 }
 0x152   : > { %4163 = vpow2.f32 %v3482_v25  ;;  %v1348_v29 = vpop.f32.mrf.mxu0  ;;  %v5038_v38 = vadd.f32 %v4930_v58, %v4898_v42  ;;  %v5042_v39 = vadd.f32 %v4936_v62, %v4902_v44  ;;  %v5049_v55 = vadd.f32 %v4948_v6, %v4904_v45  ;;  %v1080_v25 = vpop.f32.mrf.mxu1 }
 0x153   : > { %4165 = vpow2.f32 %v3481_v9  ;;  %v3484_v33 = vmul.f32 -1.442695, %v5004_v60  ;;  %v5015_v19 = vadd.f32 %v4946_v3, %v1512_v16  ;;  %v1515_v59 = vmul.f32 %v4941_v0, %v1476_v18 }
 0x154   : > { %v1475_v37 = vadd.f32 %v1348_v29, %v991_v4  ;;  %v3965_v40 = vpop.f32.mrf.mxu0  ;;  %v5053_v42 = vadd.f32 %v4955_v63, %v4908_v47  ;;  %v5063_v45 = vadd.f32 %v4973_v10, %v4910_v48  ;;  %v5071_v18 = vadd.f32 %v4989_v15, %v4914_v50 }
 0x155   : > { %4167 = vpow2.f32 %v3484_v33  ;;  %v3483_v43 = vmul.f32 -1.442695, %v5015_v19  ;;  %v5030_v11 = vadd.f32 %v4946_v3, %v1515_v59  ;;  %v1478_v20 = vadd.f32 %v3965_v40, %v1006_v7 }
 0x156   : > { %v4156_v21 = vpop.eup %4155  ;;  %v1514_v46 = vmul.f32 %v4941_v0, %v1475_v37  ;;  %v1358_v49 = vpop.f32.mrf.mxu0  ;;  %v5080_v37 = vadd.f32 %v1070_v30, %v4916_v51 }
 0x157   : > { %v1674_v61 = vadd.f32 1.0, %v4156_v21  ;;  %4169 = vpow2.f32 %v3483_v43  ;;  %v3486_v13 = vmul.f32 -1.442695, %v5030_v11  ;;  %v1517_v14 = vmul.f32 %v4941_v0, %v1478_v20  ;;  %v3942_v20 = vpop.f32.mrf.mxu1 }
 0x158   : > { %v4158_v41 = vpop.eup %4157  ;;  %v5056_v44 = vadd.f32 %v4946_v3, %v1514_v46  ;;  %v1477_v58 = vadd.f32 %v1358_v49, %v1001_v24  ;;  %v3968_v62 = vpop.f32.mrf.mxu0 }
 0x159   : > { %4171 = vrcp.f32 %v1674_v61  ;;  %v1673_v23 = vadd.f32 1.0, %v4158_v41  ;;  %v5059_v1 = vadd.f32 %v4946_v3, %v1517_v14  ;;  %v1480_v4 = vadd.f32 %v3968_v62, %v1016_v26 }
 0x15a   : > { %v4160_v7 = vpop.eup %4159  ;;  %4173 = vpow2.f32 %v3486_v13  ;;  %v3485_v47 = vmul.f32 -1.442695, %v5056_v44  ;;  %v1516_v6 = vmul.f32 %v4941_v0, %v1477_v58  ;;  %v1368_v63 = vpop.f32.mrf.mxu0 }
 0x15b   : > { %4175 = vrcp.f32 %v1673_v23  ;;  %v1676_v24 = vadd.f32 1.0, %v4160_v7  ;;  %v3488_v8 = vmul.f32 -1.442695, %v5059_v1  ;;  %v1519_v9 = vmul.f32 %v4941_v0, %v1480_v4  ;;  %v1090_v23 = vpop.f32.mrf.mxu1 }
 0x15c   : > { %v4162_v16 = vpop.eup %4161  ;;  %4177 = vpow2.f32 %v3485_v47  ;;  %v5074_v48 = vadd.f32 %v4946_v3, %v1516_v6  ;;  %v1479_v10 = vadd.f32 %v1368_v63, %v1011_v27  ;;  %v3971_v26 = vpop.f32.mrf.mxu0  ;;  %v5106_v63 = vadd.f32 %v3942_v20, %v4926_v56 }
 0x15d   : > { %4179 = vrcp.f32 %v1676_v24  ;;  %v1675_v29 = vadd.f32 1.0, %v4162_v16  ;;  %v5077_v33 = vadd.f32 %v4946_v3, %v1519_v9  ;;  %v1482_v59 = vadd.f32 %v3971_v26, %v1026_v28 }
 0x15e   : > { %4181 = vpow2.f32 %v3488_v8  ;;  %v3487_v40 = vmul.f32 -1.442695, %v5074_v48  ;;  %v1518_v50 = vmul.f32 %v4941_v0, %v1479_v10  ;;  %v1378_v15 = vpop.f32.mrf.mxu0  ;;  %v5087_v28 = vadd.f32 %v3939_v52, %v4920_v53 }
 0x15f   : > { %v4164_v43 = vpop.eup %4163  ;;  %4183 = vrcp.f32 %v1675_v29  ;;  %v3490_v27 = vmul.f32 -1.442695, %v5077_v33  ;;  %v1521_v21 = vmul.f32 %v4941_v0, %v1482_v59  ;;  %v1481_v46 = vadd.f32 %v1378_v15, %v1021_v31 }
 0x160   : > { %v4166_v49 = vpop.eup %4165  ;;  %v1678_v51 = vadd.f32 1.0, %v4164_v43  ;;  %4185 = vpow2.f32 %v3487_v40  ;;  %v5090_v30 = vadd.f32 %v4946_v3, %v1518_v50  ;;  %v3974_v61 = vpop.f32.mrf.mxu0  ;;  %v5097_v31 = vadd.f32 %v1080_v25, %v4922_v54 }
 0x161   : > { %v1677_v13 = vadd.f32 1.0, %v4166_v49  ;;  %4187 = vpow2.f32 %v3490_v27  ;;  %v5093_v14 = vadd.f32 %v4946_v3, %v1521_v21  ;;  %v1520_v41 = vmul.f32 %v4941_v0, %v1481_v46 }
 0x162   : > { %v4168_v58 = vpop.eup %4167  ;;  %4189 = vrcp.f32 %v1678_v51  ;;  %v3489_v53 = vmul.f32 -1.442695, %v5090_v30  ;;  %v1484_v52 = vadd.f32 %v3974_v61, %v5022_v32  ;;  %v1388_v62 = vpop.f32.mrf.mxu0  ;;  %v5113_v10 = vadd.f32 %v1090_v23, %v4928_v57  ;;  %v5950_v61 = vld [vmem:[#allocation5_spill] sm:$0xff] }
 0x163   : > { %4191 = vrcp.f32 %v1677_v13  ;;  %v1680_v4 = vadd.f32 1.0, %v4168_v58  ;;  %v3492_v7 = vmul.f32 -1.442695, %v5093_v14  ;;  %v5103_v47 = vadd.f32 %v4946_v3, %v1520_v41 }
 0x164   : > { %v4170_v6 = vpop.eup %4169  ;;  %4193 = vpow2.f32 %v3489_v53  ;;  %v1523_v54 = vmul.f32 %v4941_v0, %v1484_v52  ;;  %v1483_v25 = vadd.f32 %v1388_v62, %v5026_v34  ;;  %v3977_v24 = vpop.f32.mrf.mxu0 }
 0x165   : > { %4195 = vrcp.f32 %v1680_v4  ;;  %v1679_v32 = vadd.f32 1.0, %v4170_v6  ;;  %v3491_v8 = vmul.f32 -1.442695, %v5103_v47  ;;  %v1486_v9 = vadd.f32 %v3977_v24, %v5034_v36  ;;  %v3945_v34 = vpop.f32.mrf.mxu1 }
 0x166   : > { %v4172_v16 = vpop.eup %4171  ;;  %4197 = vpow2.f32 %v3492_v7  ;;  %v5116_v56 = vadd.f32 %v4946_v3, %v1523_v54  ;;  %v1522_v26 = vmul.f32 %v4941_v0, %v1483_v25  ;;  %v1398_v29 = vpop.f32.mrf.mxu0  ;;  %v5134_v13 = vadd.f32 %v3945_v34, %v5950_v61 }
 0x167   : > { %v4174_v59 = vpop.eup %4173  ;;  %v1770_v40 = vmul.f32 %v4172_v16, %v4952_v35  ;;  %4199 = vrcp.f32 %v1679_v32  ;;  %v1525_v50 = vmul.f32 %v4941_v0, %v1486_v9  ;;  %v1485_v36 = vadd.f32 %v1398_v29, %v5038_v38 }
 0x168   : > { %v4176_v15 = vpop.eup %4175  ;;  %v1682_v43 = vadd.f32 1.0, %v4174_v59  ;;  %4201 = vpow2.f32 %v3491_v8  ;;  %v3494_v57 = vmul.f32 -1.442695, %v5116_v56  ;;  %v5124_v20 = vadd.f32 %v4946_v3, %v1522_v26  ;;  %v3980_v27 = vpop.f32.mrf.mxu0 }
 0x169   : > { %v4178_v21 = vpop.eup %4177  ;;  %1839 = vst.msk [vmem:[#allocation3 + $0x18] sm:$0xff] %vm311_vm1, %v1770_v40  ;;  %v1769_v46 = vmul.f32 %v4176_v15, %v4959_v12  ;;  %v5129_v35 = vadd.f32 %v4946_v3, %v1525_v50  ;;  %v1524_v49 = vmul.f32 %v4941_v0, %v1485_v36  ;;  %v1488_v38 = vadd.f32 %v3980_v27, %v5042_v39 }
 0x16a   : > { %v4180_v51 = vpop.eup %4179  ;;  %4203 = vrcp.f32 %v1682_v43  ;;  %v1681_v41 = vadd.f32 1.0, %v4178_v21  ;;  %v3493_v58 = vmul.f32 -1.442695, %v5124_v20  ;;  %v1408_v53 = vpop.f32.mrf.mxu0 }
 0x16b   : > { %v4182_v52 = vpop.eup %4181  ;;  %1838 = vst.msk [vmem:[#allocation3 + $0x10] sm:$0xff] %vm311_vm1, %v1769_v46  ;;  %v1772_v12 = vmul.f32 %v4180_v51, %v4968_v5  ;;  %4205 = vpow2.f32 %v3494_v57  ;;  %v3496_v62 = vmul.f32 -1.442695, %v5129_v35  ;;  %v5141_v23 = vadd.f32 %v4946_v3, %v1524_v49 }
 0x16c   : > { %v4184_v39 = vpop.eup %4183  ;;  %4207 = vrcp.f32 %v1681_v41  ;;  %v1684_v4 = vadd.f32 1.0, %v4182_v52  ;;  %v1527_v7 = vmul.f32 %v4941_v0, %v1488_v38  ;;  %v1487_v6 = vadd.f32 %v1408_v53, %v5049_v55  ;;  %v3983_v54 = vpop.f32.mrf.mxu0 }
 0x16d   : > { %v4186_v25 = vpop.eup %4185  ;;  %1841 = vst.msk [vmem:[#allocation3 + $0x28] sm:$0xff] %vm311_vm1, %v1772_v12  ;;  %v1771_v24 = vmul.f32 %v4184_v39, %v4977_v17  ;;  %4209 = vpow2.f32 %v3493_v58  ;;  %v3495_v5 = vmul.f32 -1.442695, %v5141_v23  ;;  %v1490_v32 = vadd.f32 %v3983_v54, %v5053_v42 }
 0x16e   : > { %v4188_v8 = vpop.eup %4187  ;;  %4211 = vrcp.f32 %v1684_v4  ;;  %v1683_v9 = vadd.f32 1.0, %v4186_v25  ;;  %v5150_v16 = vadd.f32 %v4946_v3, %v1527_v7  ;;  %v1526_v26 = vmul.f32 %v4941_v0, %v1487_v6  ;;  %v1418_v55 = vpop.f32.mrf.mxu0  ;;  %v5951_v25 = vld [vmem:[#allocation4_spill] sm:$0xff] }
 0x16f   : > { %v4190_v29 = vpop.eup %4189  ;;  %1840 = vst.msk [vmem:[#allocation3 + $0x20] sm:$0xff] %vm311_vm1, %v1771_v24  ;;  %v1686_v59 = vadd.f32 1.0, %v4188_v8  ;;  %4213 = vpow2.f32 %v3496_v62  ;;  %v1529_v17 = vmul.f32 %v4941_v0, %v1490_v32  ;;  %v1489_v34 = vadd.f32 %v1418_v55, %v5063_v45 }
 0x170   : > { %v4192_v40 = vpop.eup %4191  ;;  %v1774_v42 = vmul.f32 %v4190_v29, %v4987_v2  ;;  %4215 = vrcp.f32 %v1683_v9  ;;  %v3498_v50 = vmul.f32 -1.442695, %v5150_v16  ;;  %v5159_v36 = vadd.f32 %v4946_v3, %v1526_v26  ;;  %v3986_v15 = vpop.f32.mrf.mxu0  ;;  %v1904_v53 = vld [vmem:[#allocation3 + $0x18] sm:$0xff] }
 0x171   : > { %v4194_v43 = vpop.eup %4193  ;;  %v1773_v57 = vmul.f32 %v4192_v40, %v4992_v22  ;;  %4217 = vrcp.f32 %v1686_v59  ;;  %v5163_v27 = vadd.f32 %v4946_v3, %v1529_v17  ;;  %v1528_v21 = vmul.f32 %v4941_v0, %v1489_v34 }
 0x172   : > { %v4196_v45 = vpop.eup %4195  ;;  %1843 = vst.msk [vmem:[#allocation3 + $0x38] sm:$0xff] %vm311_vm1, %v1774_v42  ;;  %v1685_v2 = vadd.f32 1.0, %v4194_v43  ;;  %4219 = vpow2.f32 %v3495_v5  ;;  %v3497_v46 = vmul.f32 -1.442695, %v5159_v36  ;;  %v1492_v49 = vadd.f32 %v3986_v15, %v5071_v18  ;;  %v1428_v38 = vpop.f32.mrf.mxu0  ;;  %v1903_v51 = vld [vmem:[#allocation3 + $0x10] sm:$0xff] }
 0x173   : > { %v4198_v61 = vpop.eup %4197  ;;  %1842 = vst.msk [vmem:[#allocation3 + $0x30] sm:$0xff] %vm311_vm1, %v1773_v57  ;;  %v1776_v22 = vmul.f32 %v4196_v45, %v5004_v60  ;;  %4221 = vpow2.f32 %v3498_v50  ;;  %v3500_v41 = vmul.f32 -1.442695, %v5163_v27  ;;  %v5173_v58 = vadd.f32 %v4946_v3, %v1528_v21  ;;  %3998 = vmatprep.mubr.msk.f32.mxu1 %vm311_vm1, %v1903_v51  ;;  %4051 = vmatprep.mubr.msk.f32.mxu0 %vm311_vm1, %v1903_v51  ;;  %v1100_v18 = vpop.f32.mrf.mxu1 }
 0x174   : > { %v4200_v52 = vpop.eup %4199  ;;  %4223 = vrcp.f32 %v1685_v2  ;;  %v1688_v12 = vadd.f32 1.0, %v4198_v61  ;;  %v1531_v62 = vmul.f32 %v4941_v0, %v1492_v49  ;;  %v1491_v39 = vadd.f32 %v1428_v38, %v5080_v37  ;;  %v3989_v60 = vpop.f32.mrf.mxu0  ;;  %3999 = vmatmul.mubr.msk.f32.vlgmr.msra.gmra.mxu1 %vm311_vm1, %v1904_v53  ;;  %4052 = vmatmul.mubr.msk.f32.gmra.mxu0 %vm311_vm1, %v1904_v53  ;;  %v5203_v29 = vld [vmem:[#allocation3 + $0x28] sm:$0xff] }
 0x175   : > { %v4202_v4 = vpop.eup %4201  ;;  %1845 = vst.msk [vmem:[#allocation3 + $0x48] sm:$0xff] %vm311_vm1, %v1776_v22  ;;  %v1775_v7 = vmul.f32 %v4200_v52, %v5015_v19  ;;  %4225 = vpow2.f32 %v3497_v46  ;;  %v3499_v6 = vmul.f32 -1.442695, %v5173_v58  ;;  %v1494_v54 = vadd.f32 %v3989_v60, %v5087_v28  ;;  %4097 = vmatpush3.msk.msra.mxu1 %vm556_vm0, %v5951_v25  ;;  %v5952_v19 = vld [vmem:[#allocation6_spill] sm:$0xff] }
 0x176   : > { %4227 = vrcp.f32 %v1688_v12  ;;  %v1687_v37 = vadd.f32 1.0, %v4202_v4  ;;  %v5188_v24 = vadd.f32 %v4946_v3, %v1531_v62  ;;  %v1530_v5 = vmul.f32 %v4941_v0, %v1491_v39  ;;  %v1438_v32 = vpop.f32.mrf.mxu0  ;;  %v5191_v8 = vld [vmem:[#allocation3 + $0x20] sm:$0xff] }
 0x177   : > { %v4204_v9 = vpop.eup %4203  ;;  %v5194_v26 = vadd.f32 %v1100_v18, %v5952_v19  ;;  %1844 = vst.msk [vmem:[#allocation3 + $0x40] sm:$0xff] %vm311_vm1, %v1775_v7  ;;  %4229 = vpow2.f32 %v3500_v41  ;;  %v1533_v28 = vmul.f32 %v4941_v0, %v1494_v54  ;;  %v1493_v55 = vadd.f32 %v1438_v32, %v5097_v31  ;;  %4001 = vmatprep.mubr.msk.f32.mxu1 %vm311_vm1, %v5191_v8 }
 0x178   : > { %4054 = vmatprep.mubr.msk.f32.mxu0 %vm311_vm1, %v5191_v8  ;;  %v4206_v59 = vpop.eup %4205  ;;  %v1778_v17 = vmul.f32 %v4204_v9, %v5030_v11  ;;  %4231 = vrcp.f32 %v1687_v37  ;;  %v3502_v34 = vmul.f32 -1.442695, %v5188_v24  ;;  %v5208_v40 = vadd.f32 %v4946_v3, %v1530_v5  ;;  %v3992_v42 = vpop.f32.mrf.mxu0  ;;  %4002 = vmatmul.mubr.msk.f32.gmra.mxu1 %vm311_vm1, %v5203_v29 }
 0x179   : > { %4055 = vmatmul.mubr.msk.f32.gmra.mxu0 %vm311_vm1, %v5203_v29  ;;  %v4208_v31 = vpop.eup %4207  ;;  %v1690_v50 = vadd.f32 1.0, %v4206_v59  ;;  %4233 = vpow2.f32 %v3499_v6  ;;  %v5215_v15 = vadd.f32 %v4946_v3, %v1533_v28  ;;  %v1532_v11 = vmul.f32 %v4941_v0, %v1493_v55 }
 0x17a   : > { %v4210_v43 = vpop.eup %4209  ;;  %1847 = vst.msk [vmem:[#allocation3 + $0x58] sm:$0xff] %vm311_vm1, %v1778_v17  ;;  %v1777_v57 = vmul.f32 %v4208_v31, %v5056_v44  ;;  %4235 = vpow2.f32 %v3502_v34  ;;  %v3501_v21 = vmul.f32 -1.442695, %v5208_v40  ;;  %v1496_v45 = vadd.f32 %v3992_v42, %v5106_v63  ;;  %v1448_v2 = vpop.f32.mrf.mxu0  ;;  %v5222_v46 = vld [vmem:[#allocation3 + $0x30] sm:$0xff]  ;;  %v5232_v44 = vld [vmem:[#allocation3 + $0x38] sm:$0xff] }
 0x17b   : > { %v4212_v49 = vpop.eup %4211  ;;  %4237 = vrcp.f32 %v1690_v50  ;;  %v1689_v38 = vadd.f32 1.0, %v4210_v43  ;;  %v3504_v51 = vmul.f32 -1.442695, %v5215_v15  ;;  %v5226_v61 = vadd.f32 %v4946_v3, %v1532_v11  ;;  %4004 = vmatprep.mubr.msk.f32.mxu1 %vm311_vm1, %v5222_v46  ;;  %4057 = vmatprep.mubr.msk.f32.mxu0 %vm311_vm1, %v5222_v46 }
 0x17c   : > { %v4214_v63 = vpop.eup %4213  ;;  %1846 = vst.msk [vmem:[#allocation3 + $0x50] sm:$0xff] %vm311_vm1, %v1777_v57  ;;  %v1780_v22 = vmul.f32 %v4212_v49, %v5059_v1  ;;  %4239 = vpow2.f32 %v3501_v21  ;;  %v1535_v41 = vmul.f32 %v4941_v0, %v1496_v45  ;;  %v1495_v53 = vadd.f32 %v1448_v2, %v5113_v10  ;;  %v3995_v52 = vpop.f32.mrf.mxu0  ;;  %4005 = vmatmul.mubr.msk.f32.gmra.mxu1 %vm311_vm1, %v5232_v44 }
 0x17d   : > { %4058 = vmatmul.mubr.msk.f32.gmra.mxu0 %vm311_vm1, %v5232_v44  ;;  %v4216_v18 = vpop.eup %4215  ;;  %4241 = vrcp.f32 %v1689_v38  ;;  %v1692_v12 = vadd.f32 1.0, %v4214_v63  ;;  %v3503_v62 = vmul.f32 -1.442695, %v5226_v61  ;;  %v1498_v39 = vadd.f32 %v3995_v52, %v5134_v13 }
 0x17e   : > { %v4218_v1 = vpop.eup %4217  ;;  %1849 = vst.msk [vmem:[#allocation3 + $0x68] sm:$0xff] %vm311_vm1, %v1780_v22  ;;  %v1779_v60 = vmul.f32 %v4216_v18, %v5074_v48  ;;  %4243 = vpow2.f32 %v3504_v51  ;;  %v5247_v10 = vadd.f32 %v4946_v3, %v1535_v41  ;;  %v1534_v4 = vmul.f32 %v4941_v0, %v1495_v53  ;;  %v1458_v7 = vpop.f32.mrf.mxu0  ;;  %v5250_v6 = vld [vmem:[#allocation3 + $0x40] sm:$0xff]  ;;  %v5259_v48 = vld [vmem:[#allocation3 + $0x48] sm:$0xff] }
 0x17f   : > { %v4220_v54 = vpop.eup %4219  ;;  %v1782_v25 = vmul.f32 %v4218_v1, %v5077_v33  ;;  %4245 = vrcp.f32 %v1692_v12  ;;  %v1537_v13 = vmul.f32 %v4941_v0, %v1498_v39  ;;  %v1497_v37 = vadd.f32 %v1458_v7, %v5194_v26  ;;  %4007 = vmatprep.mubr.msk.f32.mxu1 %vm311_vm1, %v5250_v6  ;;  %4060 = vmatprep.mubr.msk.f32.mxu0 %vm311_vm1, %v5250_v6 }
 0x180   : > { %v4222_v5 = vpop.eup %4221  ;;  %1848 = vst.msk [vmem:[#allocation3 + $0x60] sm:$0xff] %vm311_vm1, %v1779_v60  ;;  %v1691_v32 = vadd.f32 1.0, %v4220_v54  ;;  %4247 = vpow2.f32 %v3503_v62  ;;  %v3506_v33 = vmul.f32 -1.442695, %v5247_v10  ;;  %v5264_v9 = vadd.f32 %v4946_v3, %v1534_v4  ;;  %4008 = vmatmul.mubr.msk.f32.gmra.mxu1 %vm311_vm1, %v5259_v48 }
 0x181   : > { %4061 = vmatmul.mubr.msk.f32.gmra.mxu0 %vm311_vm1, %v5259_v48  ;;  %v4224_v19 = vpop.eup %4223  ;;  %1851 = vst.msk [vmem:[#allocation3 + $0x78] sm:$0xff] %vm311_vm1, %v1782_v25  ;;  %v1694_v26 = vadd.f32 1.0, %v4222_v5  ;;  %v5272_v28 = vadd.f32 %v4946_v3, %v1537_v13  ;;  %v1536_v55 = vmul.f32 %v4941_v0, %v1497_v37 }
 0x182   : > { %v4226_v59 = vpop.eup %4225  ;;  %v1781_v17 = vmul.f32 %v4224_v19, %v5090_v30  ;;  %4249 = vrcp.f32 %v1691_v32  ;;  %v3505_v34 = vmul.f32 -1.442695, %v5264_v9  ;;  %v5289_v30 = vld [vmem:[#allocation3 + $0x58] sm:$0xff] }
 0x183   : > { %v4228_v42 = vpop.eup %4227  ;;  %4251 = vrcp.f32 %v1694_v26  ;;  %v1693_v31 = vadd.f32 1.0, %v4226_v59  ;;  %v5278_v50 = vadd.f32 %v4946_v3, %v1536_v55  ;;  %v5280_v11 = vld [vmem:[#allocation3 + $0x50] sm:$0xff]  ;;  %v3508_v0 = vmul.f32 -1.442695, %v5272_v28 }
 0x184   : > { %v4230_v43 = vpop.eup %4229  ;;  %1850 = vst.msk [vmem:[#allocation3 + $0x70] sm:$0xff] %vm311_vm1, %v1781_v17  ;;  %v1784_v57 = vmul.f32 %v4228_v42, %v5093_v14  ;;  %4253 = vpow2.f32 %v3506_v33  ;;  %4010 = vmatprep.mubr.msk.f32.mxu1 %vm311_vm1, %v5280_v11  ;;  %4063 = vmatprep.mubr.msk.f32.mxu0 %vm311_vm1, %v5280_v11 }
 0x185   : > { %v4232_v3 = vpop.eup %4231  ;;  %4255 = vrcp.f32 %v1693_v31  ;;  %v1696_v21 = vadd.f32 1.0, %v4230_v43  ;;  %4011 = vmatmul.mubr.msk.f32.gmra.mxu1 %vm311_vm1, %v5289_v30  ;;  %4064 = vmatmul.mubr.msk.f32.gmra.mxu0 %vm311_vm1, %v5289_v30  ;;  %v3507_v38 = vmul.f32 -1.442695, %v5278_v50 }
 0x186   : > { %v4234_v14 = vpop.eup %4233  ;;  %1853 = vst.msk [vmem:[#allocation3 + $0x88] sm:$0xff] %vm311_vm1, %v1784_v57  ;;  %v1783_v45 = vmul.f32 %v4232_v3, %v5103_v47  ;;  %4257 = vpow2.f32 %v3505_v34  ;;  %v5305_v47 = vld [vmem:[#allocation3 + $0x68] sm:$0xff] }
 0x187   : > { %v4236_v2 = vpop.eup %4235  ;;  %4259 = vrcp.f32 %v1696_v21  ;;  %v1695_v49 = vadd.f32 1.0, %v4234_v14  ;;  %v5298_v51 = vld [vmem:[#allocation3 + $0x60] sm:$0xff] }
 0x188   : > { %v4238_v63 = vpop.eup %4237  ;;  %1852 = vst.msk [vmem:[#allocation3 + $0x80] sm:$0xff] %vm311_vm1, %v1783_v45  ;;  %v1698_v22 = vadd.f32 1.0, %v4236_v2  ;;  %4261 = vpow2.f32 %v3508_v0  ;;  %4013 = vmatprep.mubr.msk.f32.mxu1 %vm311_vm1, %v5298_v51  ;;  %4066 = vmatprep.mubr.msk.f32.mxu0 %vm311_vm1, %v5298_v51  ;;  %v5320_v60 = vld [vmem:[#allocation3 + $0x78] sm:$0xff] }
 0x189   : > { %v4240_v41 = vpop.eup %4239  ;;  %v1786_v53 = vmul.f32 %v4238_v63, %v5116_v56  ;;  %4263 = vrcp.f32 %v1695_v49  ;;  %4014 = vmatmul.mubr.msk.f32.gmra.mxu1 %vm311_vm1, %v5305_v47  ;;  %4067 = vmatmul.mubr.msk.f32.gmra.mxu0 %vm311_vm1, %v5305_v47 }
 0x18a   : > { %v4242_v52 = vpop.eup %4241  ;;  %4265 = vrcp.f32 %v1698_v22  ;;  %v1697_v18 = vadd.f32 1.0, %v4240_v41 }
 0x18b   : > { %v4244_v12 = vpop.eup %4243  ;;  %1855 = vst.msk [vmem:[#allocation3 + $0x98] sm:$0xff] %vm311_vm1, %v1786_v53  ;;  %v1785_v62 = vmul.f32 %v4242_v52, %v5124_v20  ;;  %4267 = vpow2.f32 %v3507_v38  ;;  %v5314_v39 = vld [vmem:[#allocation3 + $0x70] sm:$0xff] }
 0x18c   : > { %v4246_v1 = vpop.eup %4245  ;;  %4269 = vrcp.f32 %v1697_v18  ;;  %v1700_v56 = vadd.f32 1.0, %v4244_v12  ;;  %4016 = vmatprep.mubr.msk.f32.mxu1 %vm311_vm1, %v5314_v39  ;;  %4069 = vmatprep.mubr.msk.f32.mxu0 %vm311_vm1, %v5314_v39 }
 0x18d   : > { %v4248_v4 = vpop.eup %4247  ;;  %1854 = vst.msk [vmem:[#allocation3 + $0x90] sm:$0xff] %vm311_vm1, %v1785_v62  ;;  %v1788_v7 = vmul.f32 %v4246_v1, %v5129_v35  ;;  %4017 = vmatmul.mubr.msk.f32.gmra.mxu1 %vm311_vm1, %v5320_v60  ;;  %4070 = vmatmul.mubr.msk.f32.gmra.mxu0 %vm311_vm1, %v5320_v60  ;;  %v5336_v35 = vld [vmem:[#allocation3 + $0x88] sm:$0xff] }
 0x18e   : > { %4271 = vrcp.f32 %v1700_v56  ;;  %v1699_v20 = vadd.f32 1.0, %v4248_v4 }
 0x18f   : > { %v4250_v54 = vpop.eup %4249  ;;  %1857 = vst.msk [vmem:[#allocation3 + $0xa8] sm:$0xff] %vm311_vm1, %v1788_v7  ;;  %v5329_v25 = vld [vmem:[#allocation3 + $0x80] sm:$0xff] }
 0x190   : > { %v4252_v13 = vpop.eup %4251  ;;  %v1787_v37 = vmul.f32 %v4250_v54, %v5141_v23  ;;  %4273 = vrcp.f32 %v1699_v20  ;;  %4019 = vmatprep.mubr.msk.f32.mxu1 %vm311_vm1, %v5329_v25  ;;  %4072 = vmatprep.mubr.msk.f32.mxu0 %vm311_vm1, %v5329_v25 }
 0x191   : > { %v4254_v5 = vpop.eup %4253  ;;  %v1790_v32 = vmul.f32 %v4252_v13, %v5150_v16  ;;  %4020 = vmatmul.mubr.msk.f32.gmra.mxu1 %vm311_vm1, %v5336_v35  ;;  %4073 = vmatmul.mubr.msk.f32.gmra.mxu0 %vm311_vm1, %v5336_v35 }
 0x192   : > { %v4256_v33 = vpop.eup %4255  ;;  %1856 = vst.msk [vmem:[#allocation3 + $0xa0] sm:$0xff] %vm311_vm1, %v1787_v37  ;;  %v1702_v23 = vadd.f32 1.0, %v4254_v5  ;;  %v5354_v42 = vld [vmem:[#allocation3 + $0x98] sm:$0xff] }
 0x193   : > { %v4258_v19 = vpop.eup %4257  ;;  %1859 = vst.msk [vmem:[#allocation3 + $0xb8] sm:$0xff] %vm311_vm1, %v1790_v32  ;;  %v1789_v26 = vmul.f32 %v4256_v33, %v5159_v36 }
 0x194   : > { %v4260_v55 = vpop.eup %4259  ;;  %4275 = vrcp.f32 %v1702_v23  ;;  %v1701_v59 = vadd.f32 1.0, %v4258_v19  ;;  %v5346_v17 = vld [vmem:[#allocation3 + $0x90] sm:$0xff] }
 0x195   : > { %v4262_v16 = vpop.eup %4261  ;;  %1858 = vst.msk [vmem:[#allocation3 + $0xb0] sm:$0xff] %vm311_vm1, %v1789_v26  ;;  %v1792_v34 = vmul.f32 %v4260_v55, %v5163_v27  ;;  %4022 = vmatprep.mubr.msk.f32.mxu1 %vm311_vm1, %v5346_v17  ;;  %4075 = vmatprep.mubr.msk.f32.mxu0 %vm311_vm1, %v5346_v17 }
 0x196   : > { %v4264_v31 = vpop.eup %4263  ;;  %4277 = vrcp.f32 %v1701_v59  ;;  %v1704_v36 = vadd.f32 1.0, %v4262_v16  ;;  %4023 = vmatmul.mubr.msk.f32.gmra.mxu1 %vm311_vm1, %v5354_v42  ;;  %4076 = vmatmul.mubr.msk.f32.gmra.mxu0 %vm311_vm1, %v5354_v42 }
 0x197   : > { %v4266_v43 = vpop.eup %4265  ;;  %1861 = vst.msk [vmem:[#allocation3 + $0xc8] sm:$0xff] %vm311_vm1, %v1792_v34  ;;  %v1791_v27 = vmul.f32 %v4264_v31, %v5173_v58  ;;  %v5372_v58 = vld [vmem:[#allocation3 + $0xa8] sm:$0xff] }
 0x198   : > { %v4268_v57 = vpop.eup %4267  ;;  %v1794_v0 = vmul.f32 %v4266_v43, %v5188_v24  ;;  %4279 = vrcp.f32 %v1704_v36 }
 0x199   : > { %v4270_v3 = vpop.eup %4269  ;;  %1860 = vst.msk [vmem:[#allocation3 + $0xc0] sm:$0xff] %vm311_vm1, %v1791_v27  ;;  %v1703_v21 = vadd.f32 1.0, %v4268_v57  ;;  %v5364_v14 = vld [vmem:[#allocation3 + $0xa0] sm:$0xff] }
 0x19a   : > { %1863 = vst.msk [vmem:[#allocation3 + $0xd8] sm:$0xff] %vm311_vm1, %v1794_v0  ;;  %v1793_v45 = vmul.f32 %v4270_v3, %v5208_v40  ;;  %4025 = vmatprep.mubr.msk.f32.mxu1 %vm311_vm1, %v5364_v14  ;;  %4078 = vmatprep.mubr.msk.f32.mxu0 %vm311_vm1, %v5364_v14  ;;  %v5388_v63 = vld [vmem:[#allocation3 + $0xb8] sm:$0xff] }
 0x19b   : > { %v4272_v24 = vpop.eup %4271  ;;  %4281 = vrcp.f32 %v1703_v21  ;;  %4026 = vmatmul.mubr.msk.f32.gmra.mxu1 %vm311_vm1, %v5372_v58  ;;  %4079 = vmatmul.mubr.msk.f32.gmra.mxu0 %vm311_vm1, %v5372_v58 }
 0x19c   : > { %1862 = vst.msk [vmem:[#allocation3 + $0xd0] sm:$0xff] %vm311_vm1, %v1793_v45  ;;  %v1796_v40 = vmul.f32 %v4272_v24, %v5215_v15  ;;  %v5380_v2 = vld [vmem:[#allocation3 + $0xb0] sm:$0xff] }
 0x19d   : > { %v4274_v49 = vpop.eup %4273  ;;  %4028 = vmatprep.mubr.msk.f32.mxu1 %vm311_vm1, %v5380_v2  ;;  %4081 = vmatprep.mubr.msk.f32.mxu0 %vm311_vm1, %v5380_v2 }
 0x19e   : > { %1865 = vst.msk [vmem:[#allocation3 + $0xe8] sm:$0xff] %vm311_vm1, %v1796_v40  ;;  %v1795_v38 = vmul.f32 %v4274_v49, %v5226_v61  ;;  %v1926_v53 = vld [vmem:[#allocation3 + $0xc8] sm:$0xff] }
 0x19f   : > { %4029 = vmatmul.mubr.msk.f32.gmra.mxu1 %vm311_vm1, %v5388_v63  ;;  %4082 = vmatmul.mubr.msk.f32.gmra.mxu0 %vm311_vm1, %v5388_v63 }
 0x1a0   : > { %1864 = vst.msk [vmem:[#allocation3 + $0xe0] sm:$0xff] %vm311_vm1, %v1795_v38  ;;  %v1925_v15 = vld [vmem:[#allocation3 + $0xc0] sm:$0xff] }
 0x1a1   : > { %v4276_v22 = vpop.eup %4275  ;;  %4031 = vmatprep.mubr.msk.f32.mxu1 %vm311_vm1, %v1925_v15  ;;  %4084 = vmatprep.mubr.msk.f32.mxu0 %vm311_vm1, %v1925_v15  ;;  %v1928_v62 = vld [vmem:[#allocation3 + $0xd8] sm:$0xff] }
 0x1a2   : > { %v1798_v41 = vmul.f32 %v4276_v22, %v5247_v10 }
 0x1a3   : > { %v4278_v61 = vpop.eup %4277  ;;  %4032 = vmatmul.mubr.msk.f32.gmra.mxu1 %vm311_vm1, %v1926_v53  ;;  %4085 = vmatmul.mubr.msk.f32.gmra.mxu0 %vm311_vm1, %v1926_v53  ;;  %v1927_v52 = vld [vmem:[#allocation3 + $0xd0] sm:$0xff] }
 0x1a4   : > { %1867 = vst.msk [vmem:[#allocation3 + $0xf8] sm:$0xff] %vm311_vm1, %v1798_v41  ;;  %v1797_v18 = vmul.f32 %v4278_v61, %v5264_v9  ;;  %4034 = vmatprep.mubr.msk.f32.mxu1 %vm311_vm1, %v1927_v52  ;;  %4087 = vmatprep.mubr.msk.f32.mxu0 %vm311_vm1, %v1927_v52 }
 0x1a5   : > { %v4280_v12 = vpop.eup %4279  ;;  %v1930_v4 = vld [vmem:[#allocation3 + $0xe8] sm:$0xff] }
 0x1a6   : > { %1866 = vst.msk [vmem:[#allocation3 + $0xf0] sm:$0xff] %vm311_vm1, %v1797_v18  ;;  %v1800_v10 = vmul.f32 %v4280_v12, %v5272_v28 }
 0x1a7   : > { %4035 = vmatmul.mubr.msk.f32.gmra.mxu1 %vm311_vm1, %v1928_v62  ;;  %4088 = vmatmul.mubr.msk.f32.gmra.mxu0 %vm311_vm1, %v1928_v62  ;;  %v1929_v1 = vld [vmem:[#allocation3 + $0xe0] sm:$0xff] }
 0x1a8   : > { %v4282_v56 = vpop.eup %4281  ;;  %1869 = vst.msk [vmem:[#allocation3 + $0x108] sm:$0xff] %vm311_vm1, %v1800_v10  ;;  %4037 = vmatprep.mubr.msk.f32.mxu1 %vm311_vm1, %v1929_v1  ;;  %4090 = vmatprep.mubr.msk.f32.mxu0 %vm311_vm1, %v1929_v1 }
 0x1a9   : > { %v1799_v9 = vmul.f32 %v4282_v56, %v5278_v50 }
 0x1ab   : > { %1868 = vst.msk [vmem:[#allocation3 + $0x100] sm:$0xff] %vm311_vm1, %v1799_v9  ;;  %4038 = vmatmul.mubr.msk.f32.gmra.mxu1 %vm311_vm1, %v1930_v4  ;;  %4091 = vmatmul.mubr.msk.f32.gmra.mxu0 %vm311_vm1, %v1930_v4  ;;  %v1932_v7 = vld [vmem:[#allocation3 + $0xf8] sm:$0xff] }
 0x1ad   : > { %v1931_v28 = vld [vmem:[#allocation3 + $0xf0] sm:$0xff] }
 0x1ae   : > { %4040 = vmatprep.mubr.msk.f32.mxu1 %vm311_vm1, %v1931_v28  ;;  %4093 = vmatprep.mubr.msk.f32.mxu0 %vm311_vm1, %v1931_v28 }
 0x1af   : > { %4041 = vmatmul.mubr.msk.f32.gmra.mxu1 %vm311_vm1, %v1932_v7  ;;  %4094 = vmatmul.mubr.msk.f32.gmra.mxu0 %vm311_vm1, %v1932_v7  ;;  %v1934_v50 = vld [vmem:[#allocation3 + $0x108] sm:$0xff] }
 0x1b2   : > { %v1933_v20 = vld [vmem:[#allocation3 + $0x100] sm:$0xff] }
 0x1b3   : > { %4043 = vmatprep.mubr.msk.f32.mxu1 %vm311_vm1, %v1933_v20 }
 0x1b4   : > { %4044 = vmatmul.mubr.msk.f32.gmra.mxu1 %vm311_vm1, %v1934_v50 }
 0x1b5   : > { %4098 = vmatprep.mubr.msk.f32.mxu1 %vm311_vm1, %v5191_v8  ;;  %v2616_v8 = vld [vmem:[#allocation3 + $0x110] sm:$0xff] }
 0x1b8   : > { %4099 = vmatmul.mubr.msk.f32.vlgmr.msra.gmra.mxu1 %vm311_vm1, %v5203_v29  ;;  %v2617_v29 = vld [vmem:[#allocation3 + $0x118] sm:$0xff] }
 0x1b9   : > { %4101 = vmatprep.mubr.msk.f32.mxu1 %vm311_vm1, %v5222_v46  ;;  %v4050_v46 = vpop.f32.mrf.mxu0 }
 0x1bc   : > { %4102 = vmatmul.mubr.msk.f32.gmra.mxu1 %vm311_vm1, %v5232_v44  ;;  %v2426_v44 = vpop.f32.mrf.mxu0 }
 0x1bd   : > { %4104 = vmatprep.mubr.msk.f32.mxu1 %vm311_vm1, %v5250_v6 }
 0x1c0   : > { %4105 = vmatmul.mubr.msk.f32.gmra.mxu1 %vm311_vm1, %v5259_v48 }
 0x1c1   : > { %4107 = vmatprep.mubr.msk.f32.mxu1 %vm311_vm1, %v5280_v11 }
 0x1c4   : > { %4108 = vmatmul.mubr.msk.f32.gmra.mxu1 %vm311_vm1, %v5289_v30 }
 0x1c5   : > { %4110 = vmatprep.mubr.msk.f32.mxu1 %vm311_vm1, %v5298_v51 }
 0x1c8   : > { %4111 = vmatmul.mubr.msk.f32.gmra.mxu1 %vm311_vm1, %v5305_v47 }
 0x1c9   : > { %4113 = vmatprep.mubr.msk.f32.mxu1 %vm311_vm1, %v5314_v39 }
 0x1cc   : > { %4114 = vmatmul.mubr.msk.f32.gmra.mxu1 %vm311_vm1, %v5320_v60 }
 0x1cd   : > { %4116 = vmatprep.mubr.msk.f32.mxu1 %vm311_vm1, %v5329_v25 }
 0x1d0   : > { %4117 = vmatmul.mubr.msk.f32.gmra.mxu1 %vm311_vm1, %v5336_v35 }
 0x1d1   : > { %4119 = vmatprep.mubr.msk.f32.mxu1 %vm311_vm1, %v5346_v17 }
 0x1d4   : > { %4120 = vmatmul.mubr.msk.f32.gmra.mxu1 %vm311_vm1, %v5354_v42 }
 0x1d5   : > { %4122 = vmatprep.mubr.msk.f32.mxu1 %vm311_vm1, %v5364_v14 }
 0x1d8   : > { %4123 = vmatmul.mubr.msk.f32.gmra.mxu1 %vm311_vm1, %v5372_v58 }
 0x1d9   : > { %4125 = vmatprep.mubr.msk.f32.mxu1 %vm311_vm1, %v5380_v2 }
 0x1dc   : > { %4126 = vmatmul.mubr.msk.f32.gmra.mxu1 %vm311_vm1, %v5388_v63 }
 0x1dd   : > { %4128 = vmatprep.mubr.msk.f32.mxu1 %vm311_vm1, %v1925_v15 }
 0x1e0   : > { %4129 = vmatmul.mubr.msk.f32.gmra.mxu1 %vm311_vm1, %v1926_v53 }
 0x1e1   : > { %4131 = vmatprep.mubr.msk.f32.mxu1 %vm311_vm1, %v1927_v52 }
 0x1e4   : > { %4132 = vmatmul.mubr.msk.f32.gmra.mxu1 %vm311_vm1, %v1928_v62 }
 0x1e5   : > { %4134 = vmatprep.mubr.msk.f32.mxu1 %vm311_vm1, %v1929_v1  ;;  %v5564_v1 = vld [vmem:[%s5943_s5] ss:$0 sm:$0xff] }
 0x1e8   : > { %4135 = vmatmul.mubr.msk.f32.gmra.mxu1 %vm311_vm1, %v1930_v4 }
 0x1e9   : > { %4137 = vmatprep.mubr.msk.f32.mxu1 %vm311_vm1, %v1931_v28  ;;  %v5571_v28 = vld [vmem:[%s5944_s6] ss:$0 sm:$0xff] }
 0x1ec   : > { %4138 = vmatmul.mubr.msk.f32.gmra.mxu1 %vm311_vm1, %v1932_v7 }
 0x1ed   : > { %4140 = vmatprep.mubr.msk.f32.mxu1 %vm311_vm1, %v1933_v20 }
 0x1f0   : > { %4141 = vmatmul.mubr.msk.f32.gmra.mxu1 %vm311_vm1, %v1934_v50 }
 0x1f1   : > { %4143 = vmatprep.mubr.msk.f32.mxu1 %vm311_vm1, %v2616_v8 }
 0x1f4   : > { %4144 = vmatmul.mubr.msk.f32.gmra.mxu1 %vm311_vm1, %v2617_v29 }
 0x234   : > { %v4000_v6 = vpop.f32.mrf.mxu1  ;;  %v4053_v48 = vpop.f32.mrf.mxu0 }
 0x235   : > { %v2432_v10 = vadd.f32 %v4050_v46, %v4000_v6 }
 0x236   : > { %v2102_v11 = vpop.f32.mrf.mxu1  ;;  %v2436_v30 = vpop.f32.mrf.mxu0 }
 0x237   : > { %v2427_v56 = vadd.f32 %v2426_v44, %v2102_v11 }
 0x238   : > { %v4003_v51 = vpop.f32.mrf.mxu1 }
 0x239   : > { %v5473_v47 = vpop.f32.mrf.mxu0  ;;  %v2442_v20 = vadd.f32 %v4053_v48, %v4003_v51 }
 0x23a   : > { %v2112_v39 = vpop.f32.mrf.mxu1 }
 0x23b   : > { %v5477_v54 = vpop.f32.mrf.mxu0  ;;  %v2437_v46 = vadd.f32 %v2436_v30, %v2112_v39 }
 0x23c   : > { %v5475_v60 = vpop.f32.mrf.mxu1 }
 0x23d   : > { %v5483_v37 = vpop.f32.mrf.mxu0  ;;  %v2452_v30 = vadd.f32 %v5473_v47, %v5475_v60 }
 0x23e   : > { %v5479_v25 = vpop.f32.mrf.mxu1 }
 0x23f   : > { %v5487_v5 = vpop.f32.mrf.mxu0  ;;  %v2447_v39 = vadd.f32 %v5477_v54, %v5479_v25 }
 0x240   : > { %v5481_v13 = vpop.f32.mrf.mxu1 }
 0x241   : > { %v5493_v23 = vpop.f32.mrf.mxu0 }
 0x242   : > { %v5485_v35 = vpop.f32.mrf.mxu1 }
 0x243   : > { %v5499_v55 = vpop.f32.mrf.mxu0  ;;  %v2457_v25 = vadd.f32 %v5487_v5, %v5485_v35 }
 0x245   : > { %v5489_v32 = vpop.f32.mrf.mxu1  ;;  %v5505_v16 = vpop.f32.mrf.mxu0 }
 0x247   : > { %v5491_v33 = vpop.f32.mrf.mxu1  ;;  %v5511_v31 = vpop.f32.mrf.mxu0 }
 0x249   : > { %v5495_v19 = vpop.f32.mrf.mxu1  ;;  %v5517_v27 = vpop.f32.mrf.mxu0 }
 0x24b   : > { %v5497_v26 = vpop.f32.mrf.mxu1  ;;  %v5521_v0 = vpop.f32.mrf.mxu0 }
 0x24d   : > { %v5501_v59 = vpop.f32.mrf.mxu1  ;;  %v5527_v14 = vpop.f32.mrf.mxu0 }
 0x24f   : > { %v5503_v17 = vpop.f32.mrf.mxu1  ;;  %v5533_v24 = vpop.f32.mrf.mxu0 }
 0x251   : > { %v5507_v34 = vpop.f32.mrf.mxu1  ;;  %v5539_v49 = vpop.f32.mrf.mxu0 }
 0x253   : > { %v5509_v42 = vpop.f32.mrf.mxu1  ;;  %v5545_v15 = vpop.f32.mrf.mxu0 }
 0x256   : > { %v5513_v36 = vpop.f32.mrf.mxu1  ;;  %v5551_v53 = vpop.f32.mrf.mxu0 }
 0x258   : > { %v5515_v43 = vpop.f32.mrf.mxu1  ;;  %v5557_v18 = vpop.f32.mrf.mxu0 }
 0x25b   : > { %v5519_v57 = vpop.f32.mrf.mxu1  ;;  %v5566_v9 = vpop.f32.mrf.mxu0 }
 0x25d   : > { %v5523_v3 = vpop.f32.mrf.mxu1  ;;  %v5574_v6 = vpop.f32.mrf.mxu0 }
 0x25f   : > { %v5525_v21 = vpop.f32.mrf.mxu1 }
 0x261   : > { %v5529_v45 = vpop.f32.mrf.mxu1 }
 0x263   : > { %v5531_v58 = vpop.f32.mrf.mxu1 }
 0x265   : > { %v5535_v40 = vpop.f32.mrf.mxu1 }
 0x267   : > { %v5537_v2 = vpop.f32.mrf.mxu1 }
 0x269   : > { %v5541_v38 = vpop.f32.mrf.mxu1 }
 0x26b   : > { %v5543_v63 = vpop.f32.mrf.mxu1 }
 0x26d   : > { %v5547_v22 = vpop.f32.mrf.mxu1 }
 0x26f   : > { %v5549_v41 = vpop.f32.mrf.mxu1 }
 0x271   : > { %v5553_v61 = vpop.f32.mrf.mxu1 }
 0x274   : > { %v5555_v52 = vpop.f32.mrf.mxu1 }
 0x275   : > { %5953 = vst [vmem:[#allocation5_spill] sm:$0xff] %v5555_v52 }
 0x276   : > { %v5559_v12 = vpop.f32.mrf.mxu1 }
 0x277   : > { %5954 = vst [vmem:[#allocation4_spill] sm:$0xff] %v5559_v12 }
 0x278   : > { %v4100_v62 = vpop.f32.mrf.mxu1 }
 0x279   : > { %v2945_v4 = vadd.f32 %v4100_v62, %v2432_v10 }
 0x27a   : > { %v2785_v7 = vpop.f32.mrf.mxu1 }
 0x27b   : > { %v2984_v50 = vmul.f32 %v5564_v1, %v2945_v4  ;;  %v2944_v8 = vadd.f32 %v2785_v7, %v2427_v56  ;;  %v5589_v4 = vpop.f32.mrf.mxu0 }
 0x27c   : > { %v4103_v29 = vpop.f32.mrf.mxu1 }
 0x27d   : > { %v5577_v12 = vadd.f32 %v5571_v28, %v2984_v50  ;;  %v2983_v44 = vmul.f32 %v5564_v1, %v2944_v8  ;;  %v2947_v11 = vadd.f32 %v4103_v29, %v2442_v20  ;;  %v2462_v8 = vadd.f32 %v5483_v37, %v5481_v13 }
 0x27e   : > { %v2795_v10 = vpop.f32.mrf.mxu1 }
 0x27f   : > { %v3613_v62 = vmul.f32 -1.442695, %v5577_v12  ;;  %v5582_v52 = vadd.f32 %v5571_v28, %v2983_v44  ;;  %v2986_v48 = vmul.f32 %v5564_v1, %v2947_v11  ;;  %v2946_v51 = vadd.f32 %v2795_v10, %v2437_v46  ;;  %v5605_v10 = vpop.f32.mrf.mxu0 }
 0x280   : > { %v4106_v56 = vpop.f32.mrf.mxu1 }
 0x281   : > { %4283 = vpow2.f32 %v3613_v62  ;;  %v3612_v7 = vmul.f32 -1.442695, %v5582_v52  ;;  %v5593_v20 = vadd.f32 %v5571_v28, %v2986_v48  ;;  %v2985_v50 = vmul.f32 %v5564_v1, %v2946_v51 }
 0x282   : > { %v2949_v29 = vadd.f32 %v4106_v56, %v2452_v30  ;;  %v2805_v46 = vpop.f32.mrf.mxu1  ;;  %v2472_v48 = vadd.f32 %v5493_v23, %v5489_v32  ;;  %v2467_v56 = vadd.f32 %v5499_v55, %v5491_v33  ;;  %v2477_v32 = vadd.f32 %v5511_v31, %v5497_v26 }
 0x283   : > { %4285 = vpow2.f32 %v3612_v7  ;;  %v3615_v47 = vmul.f32 -1.442695, %v5593_v20  ;;  %v5600_v60 = vadd.f32 %v5571_v28, %v2985_v50  ;;  %v2948_v54 = vadd.f32 %v2805_v46, %v2447_v39 }
 0x284   : > { %v2988_v44 = vmul.f32 %v5564_v1, %v2949_v29  ;;  %v4109_v11 = vpop.f32.mrf.mxu1  ;;  %v2482_v7 = vadd.f32 %v5505_v16, %v5495_v19  ;;  %v2492_v33 = vadd.f32 %v5517_v27, %v5501_v59  ;;  %v2487_v19 = vadd.f32 %v5521_v0, %v5503_v17 }
 0x285   : > { %4287 = vpow2.f32 %v3615_v47  ;;  %v3614_v13 = vmul.f32 -1.442695, %v5600_v60  ;;  %v2987_v37 = vmul.f32 %v5564_v1, %v2948_v54  ;;  %v2951_v62 = vadd.f32 %v4109_v11, %v2462_v8  ;;  %v4086_v8 = vpop.f32.mrf.mxu0 }
 0x286   : > { %v5612_v51 = vadd.f32 %v5571_v28, %v2988_v44  ;;  %v2815_v30 = vpop.f32.mrf.mxu1  ;;  %v2502_v26 = vadd.f32 %v5527_v14, %v5507_v34  ;;  %v2497_v44 = vadd.f32 %v5533_v24, %v5509_v42  ;;  %v5645_v59 = vadd.f32 %v5539_v49, %v5513_v36 }
 0x287   : > { %4289 = vpow2.f32 %v3614_v13  ;;  %v5615_v35 = vadd.f32 %v5571_v28, %v2987_v37  ;;  %v2990_v5 = vmul.f32 %v5564_v1, %v2951_v62  ;;  %v2950_v39 = vadd.f32 %v2815_v30, %v2457_v25  ;;  %v2546_v0 = vpop.f32.mrf.mxu0 }
 0x288   : > { %v3617_v23 = vmul.f32 -1.442695, %v5612_v51  ;;  %v4112_v50 = vpop.f32.mrf.mxu1  ;;  %v5649_v17 = vadd.f32 %v5545_v15, %v5515_v43  ;;  %v5657_v42 = vadd.f32 %v5551_v53, %v5519_v57  ;;  %v5661_v36 = vadd.f32 %v5557_v18, %v5523_v3 }
 0x289   : > { %v3616_v29 = vmul.f32 -1.442695, %v5615_v35  ;;  %v5627_v46 = vadd.f32 %v5571_v28, %v2990_v5  ;;  %v2989_v47 = vmul.f32 %v5564_v1, %v2950_v39  ;;  %v2953_v54 = vadd.f32 %v4112_v50, %v2472_v48 }
 0x28a   : > { %4291 = vpow2.f32 %v3617_v23  ;;  %v2825_v55 = vpop.f32.mrf.mxu1  ;;  %v5665_v43 = vadd.f32 %v5566_v9, %v5525_v21  ;;  %v5672_v57 = vadd.f32 %v5574_v6, %v5529_v45  ;;  %v5676_v3 = vadd.f32 %v5589_v4, %v5531_v58  ;;  %v4089_v9 = vpop.f32.mrf.mxu0 }
 0x28b   : > { %4293 = vpow2.f32 %v3616_v29  ;;  %v3619_v16 = vmul.f32 -1.442695, %v5627_v46  ;;  %v5638_v31 = vadd.f32 %v5571_v28, %v2989_v47  ;;  %v2992_v25 = vmul.f32 %v5564_v1, %v2953_v54 }
 0x28c   : > { %v2952_v34 = vadd.f32 %v2825_v55, %v2467_v56  ;;  %v4115_v27 = vpop.f32.mrf.mxu1  ;;  %v5686_v45 = vadd.f32 %v5605_v10, %v5535_v40  ;;  %v5693_v47 = vadd.f32 %v4086_v8, %v5537_v2 }
 0x28d   : > { %4295 = vpow2.f32 %v3619_v16  ;;  %v3618_v14 = vmul.f32 -1.442695, %v5638_v31  ;;  %v5653_v11 = vadd.f32 %v5571_v28, %v2992_v25  ;;  %v2955_v13 = vadd.f32 %v4115_v27, %v2482_v7 }
 0x28e   : > { %v4284_v37 = vpop.eup %4283  ;;  %v2991_v24 = vmul.f32 %v5564_v1, %v2952_v34  ;;  %v2835_v49 = vpop.f32.mrf.mxu1  ;;  %v5702_v34 = vadd.f32 %v2546_v0, %v5541_v38 }
 0x28f   : > { %v3151_v15 = vadd.f32 1.0, %v4284_v37  ;;  %4297 = vpow2.f32 %v3618_v14  ;;  %v3621_v62 = vmul.f32 -1.442695, %v5653_v11  ;;  %v2994_v48 = vmul.f32 %v5564_v1, %v2955_v13 }
 0x290   : > { %v4286_v30 = vpop.eup %4285  ;;  %v5679_v21 = vadd.f32 %v5571_v28, %v2991_v24  ;;  %v2954_v53 = vadd.f32 %v2835_v49, %v2477_v32  ;;  %v4118_v18 = vpop.f32.mrf.mxu1  ;;  %v5709_v49 = vadd.f32 %v4089_v9, %v5543_v63 }
 0x291   : > { %4299 = vrcp.f32 %v3151_v15  ;;  %v3150_v5 = vadd.f32 1.0, %v4286_v30  ;;  %v5682_v39 = vadd.f32 %v5571_v28, %v2994_v48  ;;  %v2957_v56 = vadd.f32 %v4118_v18, %v2492_v33  ;;  %v2556_v33 = vpop.f32.mrf.mxu0 }
 0x292   : > { %v4288_v7 = vpop.eup %4287  ;;  %4301 = vpow2.f32 %v3621_v62  ;;  %v3620_v58 = vmul.f32 -1.442695, %v5679_v21  ;;  %v2993_v6 = vmul.f32 %v5564_v1, %v2954_v53  ;;  %v2845_v4 = vpop.f32.mrf.mxu1 }
 0x293   : > { %4303 = vrcp.f32 %v3150_v5  ;;  %v3153_v32 = vadd.f32 1.0, %v4288_v7  ;;  %v3623_v23 = vmul.f32 -1.442695, %v5682_v39  ;;  %v2996_v50 = vmul.f32 %v5564_v1, %v2957_v56  ;;  %v4092_v15 = vpop.f32.mrf.mxu0 }
 0x294   : > { %v4290_v29 = vpop.eup %4289  ;;  %4305 = vpow2.f32 %v3620_v58  ;;  %v5696_v40 = vadd.f32 %v5571_v28, %v2993_v6  ;;  %v2956_v10 = vadd.f32 %v2845_v4, %v2487_v19  ;;  %v4121_v54 = vpop.f32.mrf.mxu1  ;;  %v5728_v6 = vadd.f32 %v4092_v15, %v5549_v41  ;;  %v5955_v15 = vld [vmem:[#allocation5_spill] sm:$0xff] }
 0x295   : > { %4307 = vrcp.f32 %v3153_v32  ;;  %v3152_v55 = vadd.f32 1.0, %v4290_v29  ;;  %v5699_v16 = vadd.f32 %v5571_v28, %v2996_v50  ;;  %v2959_v25 = vadd.f32 %v4121_v54, %v2502_v26 }
 0x296   : > { %4309 = vpow2.f32 %v3623_v23  ;;  %v3622_v2 = vmul.f32 -1.442695, %v5696_v40  ;;  %v2995_v8 = vmul.f32 %v5564_v1, %v2956_v10  ;;  %v2855_v27 = vpop.f32.mrf.mxu1 }
 0x297   : > { %v4292_v14 = vpop.eup %4291  ;;  %4311 = vrcp.f32 %v3152_v55  ;;  %v3625_v19 = vmul.f32 -1.442695, %v5699_v16  ;;  %v2998_v13 = vmul.f32 %v5564_v1, %v2959_v25  ;;  %v2958_v37 = vadd.f32 %v2855_v27, %v2497_v44 }
 0x298   : > { %v4294_v24 = vpop.eup %4293  ;;  %v3155_v26 = vadd.f32 1.0, %v4292_v14  ;;  %4313 = vpow2.f32 %v3622_v2  ;;  %v5712_v38 = vadd.f32 %v5571_v28, %v2995_v8  ;;  %v4124_v0 = vpop.f32.mrf.mxu1  ;;  %v5719_v44 = vadd.f32 %v2556_v33, %v5547_v22 }
 0x299   : > { %v3154_v62 = vadd.f32 1.0, %v4294_v24  ;;  %4315 = vpow2.f32 %v3625_v19  ;;  %v5715_v48 = vadd.f32 %v5571_v28, %v2998_v13  ;;  %v2997_v30 = vmul.f32 %v5564_v1, %v2958_v37 }
 0x29a   : > { %v4296_v53 = vpop.eup %4295  ;;  %4317 = vrcp.f32 %v3155_v26  ;;  %v3624_v63 = vmul.f32 -1.442695, %v5712_v38  ;;  %v2961_v18 = vadd.f32 %v4124_v0, %v5645_v59  ;;  %v2865_v9 = vpop.f32.mrf.mxu1 }
 0x29b   : > { %4319 = vrcp.f32 %v3154_v62  ;;  %v3157_v5 = vadd.f32 1.0, %v4296_v53  ;;  %v3627_v56 = vmul.f32 -1.442695, %v5715_v48  ;;  %v5725_v7 = vadd.f32 %v5571_v28, %v2997_v30  ;;  %v2566_v59 = vpop.f32.mrf.mxu0 }
 0x29c   : > { %v4298_v58 = vpop.eup %4297  ;;  %4321 = vpow2.f32 %v3624_v63  ;;  %v3000_v22 = vmul.f32 %v5564_v1, %v2961_v18  ;;  %v2960_v4 = vadd.f32 %v2865_v9, %v5649_v17  ;;  %v4127_v32 = vpop.f32.mrf.mxu1  ;;  %v5735_v54 = vadd.f32 %v2566_v59, %v5553_v61 }
 0x29d   : > { %4323 = vrcp.f32 %v3157_v5  ;;  %v3156_v23 = vadd.f32 1.0, %v4298_v58  ;;  %v3626_v50 = vmul.f32 -1.442695, %v5725_v7  ;;  %v2963_v29 = vadd.f32 %v4127_v32, %v5657_v42  ;;  %v4095_v37 = vpop.f32.mrf.mxu0 }
 0x29e   : > { %v4300_v10 = vpop.eup %4299  ;;  %4325 = vpow2.f32 %v3627_v56  ;;  %v5745_v41 = vadd.f32 %v5571_v28, %v3000_v22  ;;  %v2999_v17 = vmul.f32 %v5564_v1, %v2960_v4  ;;  %v2875_v33 = vpop.f32.mrf.mxu1  ;;  %v5764_v62 = vadd.f32 %v4095_v37, %v5955_v15 }
 0x29f   : > { %v4302_v55 = vpop.eup %4301  ;;  %v3247_v42 = vmul.f32 %v4300_v10, %v5577_v12  ;;  %4327 = vrcp.f32 %v3156_v23  ;;  %v3002_v61 = vmul.f32 %v5564_v1, %v2963_v29  ;;  %v2962_v25 = vadd.f32 %v2875_v33, %v5661_v36 }
 0x2a0   : > { %v4304_v2 = vpop.eup %4303  ;;  %v3159_v8 = vadd.f32 1.0, %v4302_v55  ;;  %4329 = vpow2.f32 %v3626_v50  ;;  %v3629_v27 = vmul.f32 -1.442695, %v5745_v41  ;;  %v5753_v14 = vadd.f32 %v5571_v28, %v2999_v17  ;;  %v4130_v19 = vpop.f32.mrf.mxu1 }
 0x2a1   : > { %v4306_v13 = vpop.eup %4305  ;;  %3279 = vst.msk [vmem:[%s5742_s8 + $0x8] sm:$0xff] %vm311_vm1, %v3247_v42  ;;  %v3246_v12 = vmul.f32 %v4304_v2, %v5582_v52  ;;  %v5759_v24 = vadd.f32 %v5571_v28, %v3002_v61  ;;  %v3001_v36 = vmul.f32 %v5564_v1, %v2962_v25  ;;  %v2965_v26 = vadd.f32 %v4130_v19, %v5665_v43 }
 0x2a2   : > { %v4308_v0 = vpop.eup %4307  ;;  %4331 = vrcp.f32 %v3159_v8  ;;  %v3158_v30 = vadd.f32 1.0, %v4306_v13  ;;  %v3628_v53 = vmul.f32 -1.442695, %v5753_v14  ;;  %v2885_v63 = vpop.f32.mrf.mxu1 }
 0x2a3   : > { %v4310_v18 = vpop.eup %4309  ;;  %3278 = vst.msk [vmem:[%s5742_s8] sm:$0xff] %vm311_vm1, %v3246_v12  ;;  %v3249_v52 = vmul.f32 %v4308_v0, %v5593_v20  ;;  %4333 = vpow2.f32 %v3629_v27  ;;  %v3631_v9 = vmul.f32 -1.442695, %v5759_v24  ;;  %v5772_v43 = vadd.f32 %v5571_v28, %v3001_v36 }
 0x2a4   : > { %v4312_v5 = vpop.eup %4311  ;;  %4335 = vrcp.f32 %v3158_v30  ;;  %v3161_v56 = vadd.f32 1.0, %v4310_v18  ;;  %v3004_v58 = vmul.f32 %v5564_v1, %v2965_v26  ;;  %v2964_v22 = vadd.f32 %v2885_v63, %v5672_v57  ;;  %v4133_v4 = vpop.f32.mrf.mxu1 }
 0x2a5   : > { %v4314_v32 = vpop.eup %4313  ;;  %3281 = vst.msk [vmem:[%s5742_s8 + $0x18] sm:$0xff] %vm311_vm1, %v3249_v52  ;;  %v3248_v20 = vmul.f32 %v4312_v5, %v5600_v60  ;;  %4337 = vpow2.f32 %v3628_v53  ;;  %v3630_v59 = vmul.f32 -1.442695, %v5772_v43  ;;  %v2967_v23 = vadd.f32 %v4133_v4, %v5676_v3 }
 0x2a6   : > { %v4316_v50 = vpop.eup %4315  ;;  %4339 = vrcp.f32 %v3161_v56  ;;  %v3160_v29 = vadd.f32 1.0, %v4314_v32  ;;  %v5782_v10 = vadd.f32 %v5571_v28, %v3004_v58  ;;  %v3003_v17 = vmul.f32 %v5564_v1, %v2964_v22  ;;  %v2895_v57 = vpop.f32.mrf.mxu1 }
 0x2a7   : > { %v4318_v33 = vpop.eup %4317  ;;  %3280 = vst.msk [vmem:[%s5742_s8 + $0x10] sm:$0xff] %vm311_vm1, %v3248_v20  ;;  %v3163_v55 = vadd.f32 1.0, %v4316_v50  ;;  %4341 = vpow2.f32 %v3631_v9  ;;  %v3006_v60 = vmul.f32 %v5564_v1, %v2967_v23  ;;  %v2966_v42 = vadd.f32 %v2895_v57, %v5686_v45  ;;  %v2576_v58 = vpop.f32.mrf.mxu0 }
 0x2a8   : > { %v4320_v3 = vpop.eup %4319  ;;  %v3251_v61 = vmul.f32 %v4318_v33, %v5612_v51  ;;  %4343 = vrcp.f32 %v3160_v29  ;;  %v3633_v25 = vmul.f32 -1.442695, %v5782_v10  ;;  %v5792_v2 = vadd.f32 %v5571_v28, %v3003_v17  ;;  %v4136_v8 = vpop.f32.mrf.mxu1 }
 0x2a9   : > { %v4322_v27 = vpop.eup %4321  ;;  %v3250_v19 = vmul.f32 %v4320_v3, %v5615_v35  ;;  %4345 = vrcp.f32 %v3163_v55  ;;  %v5796_v13 = vadd.f32 %v5571_v28, %v3006_v60  ;;  %v3005_v45 = vmul.f32 %v5564_v1, %v2966_v42 }
 0x2aa   : > { %v4324_v37 = vpop.eup %4323  ;;  %3283 = vst.msk [vmem:[%s5742_s8 + $0x28] sm:$0xff] %vm311_vm1, %v3251_v61  ;;  %v3162_v51 = vadd.f32 1.0, %v4322_v27  ;;  %4347 = vpow2.f32 %v3630_v59  ;;  %v3632_v12 = vmul.f32 -1.442695, %v5792_v2  ;;  %v2969_v36 = vadd.f32 %v4136_v8, %v5693_v47  ;;  %v2905_v26 = vpop.f32.mrf.mxu1  ;;  %v5956_v59 = vld [vmem:[#allocation4_spill] sm:$0xff] }
 0x2ab   : > { %v4326_v0 = vpop.eup %4325  ;;  %3282 = vst.msk [vmem:[%s5742_s8 + $0x20] sm:$0xff] %vm311_vm1, %v3250_v19  ;;  %v3253_v35 = vmul.f32 %v4324_v37, %v5627_v46  ;;  %4349 = vpow2.f32 %v3633_v25  ;;  %v3635_v15 = vmul.f32 -1.442695, %v5796_v13  ;;  %v5808_v30 = vadd.f32 %v5571_v28, %v3005_v45 }
 0x2ac   : > { %v4328_v53 = vpop.eup %4327  ;;  %4351 = vrcp.f32 %v3162_v51  ;;  %v3165_v63 = vadd.f32 1.0, %v4326_v0  ;;  %v3008_v18 = vmul.f32 %v5564_v1, %v2969_v36  ;;  %v2968_v52 = vadd.f32 %v2905_v26, %v5702_v34  ;;  %v4139_v47 = vpop.f32.mrf.mxu1 }
 0x2ad   : > { %v4330_v9 = vpop.eup %4329  ;;  %3285 = vst.msk [vmem:[%s5742_s8 + $0x38] sm:$0xff] %vm311_vm1, %v3253_v35  ;;  %v3252_v46 = vmul.f32 %v4328_v53, %v5638_v31  ;;  %4353 = vpow2.f32 %v3632_v12  ;;  %v3634_v5 = vmul.f32 -1.442695, %v5808_v30  ;;  %v2971_v56 = vadd.f32 %v4139_v47, %v5709_v49 }
 0x2ae   : > { %4355 = vrcp.f32 %v3165_v63  ;;  %v3164_v22 = vadd.f32 1.0, %v4330_v9  ;;  %v5818_v4 = vadd.f32 %v5571_v28, %v3008_v18  ;;  %v3007_v34 = vmul.f32 %v5564_v1, %v2968_v52  ;;  %v2915_v32 = vpop.f32.mrf.mxu1 }
 0x2af   : > { %v4332_v20 = vpop.eup %4331  ;;  %v2577_v23 = vadd.f32 %v2576_v58, %v5956_v59  ;;  %3284 = vst.msk [vmem:[%s5742_s8 + $0x30] sm:$0xff] %vm311_vm1, %v3252_v46  ;;  %4357 = vpow2.f32 %v3635_v15  ;;  %v3010_v31 = vmul.f32 %v5564_v1, %v2971_v56  ;;  %v2970_v49 = vadd.f32 %v2915_v32, %v5719_v44 }
 0x2b0   : > { %v4334_v50 = vpop.eup %4333  ;;  %v3255_v29 = vmul.f32 %v4332_v20, %v5653_v11  ;;  %4359 = vrcp.f32 %v3164_v22  ;;  %v3637_v17 = vmul.f32 -1.442695, %v5818_v4  ;;  %v5829_v57 = vadd.f32 %v5571_v28, %v3007_v34  ;;  %v4142_v33 = vpop.f32.mrf.mxu1 }
 0x2b1   : > { %v4336_v55 = vpop.eup %4335  ;;  %v3167_v60 = vadd.f32 1.0, %v4334_v50  ;;  %4361 = vpow2.f32 %v3634_v5  ;;  %v5832_v42 = vadd.f32 %v5571_v28, %v3010_v31  ;;  %v3009_v3 = vmul.f32 %v5564_v1, %v2970_v49 }
 0x2b2   : > { %v4338_v44 = vpop.eup %4337  ;;  %3287 = vst.msk [vmem:[%s5742_s8 + $0x48] sm:$0xff] %vm311_vm1, %v3255_v29  ;;  %v3254_v11 = vmul.f32 %v4336_v55, %v5679_v21  ;;  %4363 = vpow2.f32 %v3637_v17  ;;  %v3636_v61 = vmul.f32 -1.442695, %v5829_v57  ;;  %v2973_v25 = vadd.f32 %v4142_v33, %v5728_v6  ;;  %v2925_v8 = vpop.f32.mrf.mxu1 }
 0x2b3   : > { %v4340_v27 = vpop.eup %4339  ;;  %4365 = vrcp.f32 %v3167_v60  ;;  %v3166_v19 = vadd.f32 1.0, %v4338_v44  ;;  %v3639_v45 = vmul.f32 -1.442695, %v5832_v42  ;;  %v5842_v37 = vadd.f32 %v5571_v28, %v3009_v3 }
 0x2b4   : > { %v4342_v51 = vpop.eup %4341  ;;  %3286 = vst.msk [vmem:[%s5742_s8 + $0x40] sm:$0xff] %vm311_vm1, %v3254_v11  ;;  %v3257_v21 = vmul.f32 %v4340_v27, %v5682_v39  ;;  %4367 = vpow2.f32 %v3636_v61  ;;  %v3012_v12 = vmul.f32 %v5564_v1, %v2973_v25  ;;  %v2972_v6 = vadd.f32 %v2925_v8, %v5735_v54  ;;  %v4145_v36 = vpop.f32.mrf.mxu1 }
 0x2b5   : > { %v4344_v26 = vpop.eup %4343  ;;  %4369 = vrcp.f32 %v3166_v19  ;;  %v3169_v0 = vadd.f32 1.0, %v4342_v51  ;;  %v3638_v35 = vmul.f32 -1.442695, %v5842_v37  ;;  %v2975_v15 = vadd.f32 %v4145_v36, %v5764_v62 }
 0x2b6   : > { %v4346_v53 = vpop.eup %4345  ;;  %3289 = vst.msk [vmem:[%s5742_s8 + $0x58] sm:$0xff] %vm311_vm1, %v3257_v21  ;;  %v3256_v63 = vmul.f32 %v4344_v26, %v5696_v40  ;;  %4371 = vpow2.f32 %v3639_v45  ;;  %v5855_v39 = vadd.f32 %v5571_v28, %v3012_v12  ;;  %v3011_v54 = vmul.f32 %v5564_v1, %v2972_v6  ;;  %v2935_v18 = vpop.f32.mrf.mxu1 }
 0x2b7   : > { %v4348_v52 = vpop.eup %4347  ;;  %v3259_v47 = vmul.f32 %v4346_v53, %v5699_v16  ;;  %4373 = vrcp.f32 %v3169_v0  ;;  %v3014_v9 = vmul.f32 %v5564_v1, %v2975_v15  ;;  %v2974_v62 = vadd.f32 %v2935_v18, %v2577_v23 }
 0x2b8   : > { %v4350_v46 = vpop.eup %4349  ;;  %3288 = vst.msk [vmem:[%s5742_s8 + $0x50] sm:$0xff] %vm311_vm1, %v3256_v63  ;;  %v3168_v5 = vadd.f32 1.0, %v4348_v52  ;;  %4375 = vpow2.f32 %v3638_v35  ;;  %v3641_v40 = vmul.f32 -1.442695, %v5855_v39  ;;  %v5864_v56 = vadd.f32 %v5571_v28, %v3011_v54 }
 0x2b9   : > { %v4352_v58 = vpop.eup %4351  ;;  %3291 = vst.msk [vmem:[%s5742_s8 + $0x68] sm:$0xff] %vm311_vm1, %v3259_v47  ;;  %v3171_v22 = vadd.f32 1.0, %v4350_v46  ;;  %v5869_v16 = vadd.f32 %v5571_v28, %v3014_v9  ;;  %v3013_v34 = vmul.f32 %v5564_v1, %v2974_v62 }
 0x2ba   : > { %v4354_v32 = vpop.eup %4353  ;;  %v3258_v20 = vmul.f32 %v4352_v58, %v5712_v38  ;;  %4377 = vrcp.f32 %v3168_v5  ;;  %v3640_v59 = vmul.f32 -1.442695, %v5864_v56 }
 0x2bb   : > { %v4356_v23 = vpop.eup %4355  ;;  %4379 = vrcp.f32 %v3171_v22  ;;  %v3170_v31 = vadd.f32 1.0, %v4354_v32  ;;  %v5875_v49 = vadd.f32 %v5571_v28, %v3013_v34  ;;  %v3643_v1 = vmul.f32 -1.442695, %v5869_v16 }
 0x2bc   : > { %v4358_v50 = vpop.eup %4357  ;;  %3290 = vst.msk [vmem:[%s5742_s8 + $0x60] sm:$0xff] %vm311_vm1, %v3258_v20  ;;  %v3261_v29 = vmul.f32 %v4356_v23, %v5715_v48  ;;  %4381 = vpow2.f32 %v3641_v40 }
 0x2bd   : > { %v4360_v38 = vpop.eup %4359  ;;  %4383 = vrcp.f32 %v3170_v31  ;;  %v3173_v17 = vadd.f32 1.0, %v4358_v50  ;;  %v3642_v3 = vmul.f32 -1.442695, %v5875_v49 }
 0x2be   : > { %v4362_v33 = vpop.eup %4361  ;;  %3293 = vst.msk [vmem:[%s5742_s8 + $0x78] sm:$0xff] %vm311_vm1, %v3261_v29  ;;  %v3260_v55 = vmul.f32 %v4360_v38, %v5725_v7  ;;  %4385 = vpow2.f32 %v3640_v59 }
 0x2bf   : > { %v4364_v28 = vpop.eup %4363  ;;  %4387 = vrcp.f32 %v3173_v17  ;;  %v3172_v60 = vadd.f32 1.0, %v4362_v33 }
 0x2c0   : > { %v4366_v44 = vpop.eup %4365  ;;  %3292 = vst.msk [vmem:[%s5742_s8 + $0x70] sm:$0xff] %vm311_vm1, %v3260_v55  ;;  %v3175_v48 = vadd.f32 1.0, %v4364_v28  ;;  %4389 = vpow2.f32 %v3643_v1 }
 0x2c1   : > { %v4368_v11 = vpop.eup %4367  ;;  %v3263_v61 = vmul.f32 %v4366_v44, %v5745_v41  ;;  %4391 = vrcp.f32 %v3172_v60 }
 0x2c2   : > { %v4370_v25 = vpop.eup %4369  ;;  %4393 = vrcp.f32 %v3175_v48  ;;  %v3174_v7 = vadd.f32 1.0, %v4368_v11 }
 0x2c3   : > { %v4372_v8 = vpop.eup %4371  ;;  %3295 = vst.msk [vmem:[%s5742_s8 + $0x88] sm:$0xff] %vm311_vm1, %v3263_v61  ;;  %v3262_v27 = vmul.f32 %v4370_v25, %v5753_v14  ;;  %4395 = vpow2.f32 %v3642_v3 }
 0x2c4   : > { %v4374_v19 = vpop.eup %4373  ;;  %4397 = vrcp.f32 %v3174_v7  ;;  %v3177_v45 = vadd.f32 1.0, %v4372_v8 }
 0x2c5   : > { %v4376_v51 = vpop.eup %4375  ;;  %3294 = vst.msk [vmem:[%s5742_s8 + $0x80] sm:$0xff] %vm311_vm1, %v3262_v27  ;;  %v3265_v41 = vmul.f32 %v4374_v19, %v5759_v24 }
 0x2c6   : > { %4399 = vrcp.f32 %v3177_v45  ;;  %v3176_v21 = vadd.f32 1.0, %v4376_v51 }
 0x2c7   : > { %v4378_v12 = vpop.eup %4377  ;;  %3297 = vst.msk [vmem:[%s5742_s8 + $0x98] sm:$0xff] %vm311_vm1, %v3265_v41 }
 0x2c8   : > { %v4380_v6 = vpop.eup %4379  ;;  %v3264_v14 = vmul.f32 %v4378_v12, %v5772_v43  ;;  %4401 = vrcp.f32 %v3176_v21 }
 0x2c9   : > { %v4382_v36 = vpop.eup %4381  ;;  %v3267_v26 = vmul.f32 %v4380_v6, %v5782_v10 }
 0x2ca   : > { %v4384_v0 = vpop.eup %4383  ;;  %3296 = vst.msk [vmem:[%s5742_s8 + $0x90] sm:$0xff] %vm311_vm1, %v3264_v14  ;;  %v3179_v35 = vadd.f32 1.0, %v4382_v36 }
 0x2cb   : > { %v4386_v15 = vpop.eup %4385  ;;  %3299 = vst.msk [vmem:[%s5742_s8 + $0xa8] sm:$0xff] %vm311_vm1, %v3267_v26  ;;  %v3266_v24 = vmul.f32 %v4384_v0, %v5792_v2 }
 0x2cc   : > { %v4388_v53 = vpop.eup %4387  ;;  %4403 = vrcp.f32 %v3179_v35  ;;  %v3178_v63 = vadd.f32 1.0, %v4386_v15 }
 0x2cd   : > { %v4390_v43 = vpop.eup %4389  ;;  %3298 = vst.msk [vmem:[%s5742_s8 + $0xa0] sm:$0xff] %vm311_vm1, %v3266_v24  ;;  %v3269_v10 = vmul.f32 %v4388_v53, %v5796_v13 }
 0x2ce   : > { %v4392_v54 = vpop.eup %4391  ;;  %4405 = vrcp.f32 %v3178_v63  ;;  %v3181_v18 = vadd.f32 1.0, %v4390_v43 }
 0x2cf   : > { %v4394_v52 = vpop.eup %4393  ;;  %3301 = vst.msk [vmem:[%s5742_s8 + $0xb8] sm:$0xff] %vm311_vm1, %v3269_v10  ;;  %v3268_v2 = vmul.f32 %v4392_v54, %v5808_v30 }
 0x2d0   : > { %v4396_v47 = vpop.eup %4395  ;;  %v3271_v9 = vmul.f32 %v4394_v52, %v5818_v4  ;;  %4407 = vrcp.f32 %v3181_v18 }
 0x2d1   : > { %v4398_v62 = vpop.eup %4397  ;;  %3300 = vst.msk [vmem:[%s5742_s8 + $0xb0] sm:$0xff] %vm311_vm1, %v3268_v2  ;;  %v3180_v13 = vadd.f32 1.0, %v4396_v47 }
 0x2d2   : > { %3303 = vst.msk [vmem:[%s5742_s8 + $0xc8] sm:$0xff] %vm311_vm1, %v3271_v9  ;;  %v3270_v46 = vmul.f32 %v4398_v62, %v5829_v57 }
 0x2d3   : > { %v4400_v5 = vpop.eup %4399  ;;  %4409 = vrcp.f32 %v3180_v13 }
 0x2d4   : > { %3302 = vst.msk [vmem:[%s5742_s8 + $0xc0] sm:$0xff] %vm311_vm1, %v3270_v46  ;;  %v3273_v30 = vmul.f32 %v4400_v5, %v5832_v42 }
 0x2d5   : > { %v4402_v4 = vpop.eup %4401 }
 0x2d6   : > { %3305 = vst.msk [vmem:[%s5742_s8 + $0xd8] sm:$0xff] %vm311_vm1, %v3273_v30  ;;  %v3272_v40 = vmul.f32 %v4402_v4, %v5842_v37 }
 0x2d8   : > { %3304 = vst.msk [vmem:[%s5742_s8 + $0xd0] sm:$0xff] %vm311_vm1, %v3272_v40 }
 0x2d9   : > { %v4404_v58 = vpop.eup %4403 }
 0x2da   : > { %v3275_v22 = vmul.f32 %v4404_v58, %v5855_v39 }
 0x2db   : > { %v4406_v34 = vpop.eup %4405 }
 0x2dc   : > { %3307 = vst.msk [vmem:[%s5742_s8 + $0xe8] sm:$0xff] %vm311_vm1, %v3275_v22  ;;  %v3274_v57 = vmul.f32 %v4406_v34, %v5864_v56 }
 0x2dd   : > { %v4408_v32 = vpop.eup %4407 }
 0x2de   : > { %3306 = vst.msk [vmem:[%s5742_s8 + $0xe0] sm:$0xff] %vm311_vm1, %v3274_v57  ;;  %v3277_v42 = vmul.f32 %v4408_v32, %v5869_v16 }
 0x2e0   : > { %v4410_v20 = vpop.eup %4409  ;;  %3309 = vst.msk [vmem:[%s5742_s8 + $0xf8] sm:$0xff] %vm311_vm1, %v3277_v42 }
 0x2e1   : > { %v3276_v37 = vmul.f32 %v4410_v20, %v5875_v49 }
 0x2e3   : > { %3308 = vst.msk [vmem:[%s5742_s8 + $0xf0] sm:$0xff] %vm311_vm1, %v3276_v37 }
 0x2e4 PF: > { %s17_s24 = sadd.s32 1, %s4417_s24  }
 0x2e5   : > { %p14_p4 = scmp.ge.s32.totalorder %s17_s24, 4  }
 0x2e7   :  { %16 = sbr.rel (!%p14_p4) target bundleno = 1 (0x1), region = 84 }

</bundles_post_ra>
